<compile_context>
chip_gen: v7x
topology: tpu7x:2x2x1
jax: 0.10.0
libtpu: 0.0.40
codegen_flags: <defaults>
</compile_context>

<pallas_src>
import math

import jax
import jax.numpy as jnp
from jax.experimental import pallas as pl
from jax.experimental.pallas import tpu as pltpu


# ----------------------------- kernel helpers ---------------------------------

def _layer_norm(x, gamma, beta, eps=1e-5):
    mean = jnp.mean(x, axis=-1, keepdims=True)
    var = jnp.mean((x - mean) ** 2, axis=-1, keepdims=True)
    return (x - mean) * jax.lax.rsqrt(var + eps) * gamma + beta


def _mha(q_in, kv_in, wq3, wkv3, wo3, add_mask):
    """Head-batched multi-head attention on one query tile.

    q_in:  (Lq, E)  f32   query-side activations
    kv_in: (Lk, E)  f32   key/value-side activations
    wq3:   (H,  E, Dh) bf16  per-head Q projection
    wkv3:  (2H, E, Dh) bf16  fused per-head K (first H) and V (last H) projection
    wo3:   (H, Dh, E)  bf16  per-head output projection
    add_mask: additive f32 mask broadcastable to (H, Lq, Lk)
    returns (Lq, E) f32
    """
    bf16 = jnp.bfloat16
    h = wq3.shape[0]
    dh = wq3.shape[2]
    lq, e = q_in.shape
    lk = kv_in.shape[0]

    # Batched projections: heads ride the leading (batch) dim of dot_general.
    q_b = jnp.broadcast_to(q_in.astype(bf16)[None], (h, lq, e))
    kv_b = jnp.broadcast_to(kv_in.astype(bf16)[None], (2 * h, lk, e))
    qh = jnp.einsum("hqe,hed->hqd", q_b, wq3, preferred_element_type=jnp.float32)
    kvh = jnp.einsum("hke,hed->hkd", kv_b, wkv3, preferred_element_type=jnp.float32)
    kh = kvh[:h]          # (H, Lk, Dh)  — free major-dim split, no lane slicing
    vh = kvh[h:]          # (H, Lk, Dh)

    qh = qh * (1.0 / math.sqrt(dh))
    logits = jnp.einsum("hqd,hkd->hqk", qh.astype(bf16), kh.astype(bf16),
                        preferred_element_type=jnp.float32)
    logits = logits + add_mask

    m = jnp.max(logits, axis=-1, keepdims=True)
    p = jnp.exp(logits - m)
    p = p * pl.reciprocal(jnp.sum(p, axis=-1, keepdims=True), approx=True)

    ctx = jnp.einsum("hqk,hkd->hqd", p.astype(bf16), vh.astype(bf16),
                     preferred_element_type=jnp.float32)
    per_head = jnp.einsum("hqd,hde->hqe", ctx.astype(bf16), wo3,
                          preferred_element_type=jnp.float32)
    return jnp.sum(per_head, axis=0)          # combine heads -> (Lq, E)


# ------------------------------- Pallas kernel ---------------------------------

def decoder_block_kernel(
    xq_ref, xkv_ref, enc_ref, smask_ref,
    wq_s_ref, wkv_s_ref, wo_s_ref,
    wq_c_ref, wkv_c_ref, wo_c_ref,
    w1_ref, b1_ref, w2_ref, b2_ref,
    g1_ref, be1_ref, g2_ref, be2_ref, g3_ref, be3_ref,
    out_ref,
):
    bf16 = jnp.bfloat16
    x_q = xq_ref[0]        # (TQ, E) f32  query tile of the decoder input
    x_kv = xkv_ref[0]      # (T,  E) f32  full decoder input (self-attn K/V source)
    enc = enc_ref[0]       # (S,  E) f32  encoder hidden states
    smask = smask_ref[0]   # (1,  S) f32  additive src-padding mask

    tq = x_q.shape[0]
    t = x_kv.shape[0]

    # Hoist parameter reads: exactly one load per grid step.
    g1, be1 = g1_ref[...], be1_ref[...]
    g2, be2 = g2_ref[...], be2_ref[...]
    g3, be3 = g3_ref[...], be3_ref[...]
    b1, b2 = b1_ref[...], b2_ref[...]

    # In-kernel causal ("future") mask for this query tile — no (T, T) HBM mask.
    row0 = pl.program_id(1) * tq
    rows = row0 + jax.lax.broadcasted_iota(jnp.int32, (tq, t), 0)
    cols = jax.lax.broadcasted_iota(jnp.int32, (tq, t), 1)
    causal = jnp.where(cols <= rows, jnp.float32(0.0), jnp.float32(-1e30))

    # 1) masked self-attention (dropout1 == identity), residual, layer_norm1
    attn1 = _mha(x_q, x_kv, wq_s_ref[...], wkv_s_ref[...], wo_s_ref[...], causal)
    x1 = _layer_norm(x_q + attn1, g1, be1)

    # 2) cross-attention over encoder states (dropout2 == identity), residual, LN2
    attn2 = _mha(x1, enc, wq_c_ref[...], wkv_c_ref[...], wo_c_ref[...], smask)
    x2 = _layer_norm(x1 + attn2, g2, be2)

    # 3) feed-forward Linear -> ReLU -> Linear (dropout3 == identity), residual, LN3
    hdn = jnp.maximum(
        jnp.dot(x2.astype(bf16), w1_ref[...], preferred_element_type=jnp.float32) + b1,
        0.0)
    ff = jnp.dot(hdn.astype(bf16), w2_ref[...], preferred_element_type=jnp.float32) + b2
    x3 = _layer_norm(x2 + ff, g3, be3)

    out_ref[0] = x3


# --------------------------------- wrapper --------------------------------------

def transformer_decoder_block(x, enc, src_padding_mask, kernel_params, *, tq=None):
    N, T, E = x.shape
    _, S, _ = enc.shape
    if tq is None:
        tq = min(T, 128)
    assert T % tq == 0, "query-tile size must divide T"

    neg = jnp.float32(-1e30)
    smask = jnp.where(src_padding_mask, 0.0, neg).astype(jnp.float32).reshape(N, 1, S)

    def const_spec(a):
        # Weights / LN params: block == full array, block index never changes, so
        # they are fetched once and stay resident across the grid.
        # NOTE: on v7x (64 MiB VMEM) add pipeline_mode=pl.Buffered(1) here to
        # single-buffer these never-changing blocks at large E/F.
        nd = a.ndim
        return pl.BlockSpec(a.shape, lambda b, tt, _nd=nd: (0,) * _nd)

    in_specs = [
        pl.BlockSpec((1, tq, E), lambda b, tt: (b, tt, 0)),   # x: query tile
        pl.BlockSpec((1, T, E), lambda b, tt: (b, 0, 0)),     # x: full rows (self K/V)
        pl.BlockSpec((1, S, E), lambda b, tt: (b, 0, 0)),     # encoder states
        pl.BlockSpec((1, 1, S), lambda b, tt: (b, 0, 0)),     # src padding mask
    ] + [const_spec(p) for p in kernel_params]

    return pl.pallas_call(
        decoder_block_kernel,
        out_shape=jax.ShapeDtypeStruct((N, T, E), jnp.float32),
        grid=(N, T // tq),
        in_specs=in_specs,
        out_specs=pl.BlockSpec((1, tq, E), lambda b, tt: (b, tt, 0)),
        compiler_params=pltpu.CompilerParams(
            dimension_semantics=("parallel", "parallel"),
            # Toy shapes need only KBs; set explicitly so real shapes budget against
            # 128 MiB (v5e/v6e) or 64 MiB (v7x) instead of the default scoped limit.
            vmem_limit_bytes=32 * 1024 * 1024,
        ),
    )(x, x, enc, smask, *kernel_params)


# --------------------------- parameter preparation ------------------------------

def prepare_kernel_params(params2d, num_heads):
    """Repack the (in_dim, out_dim) f32 weights into head-major bf16 tensors:
    Wq -> (H, E, Dh); fused [Wk; Wv] -> (2H, E, Dh); Wo -> (H, Dh, E)."""
    (wq_s, wk_s, wv_s, wo_s, wq_c, wk_c, wv_c, wo_c,
     w1, b1, w2, b2, g1, be1, g2, be2, g3, be3) = params2d
    E = wq_s.shape[0]
    H = num_heads
    Dh = E // H
    bf16 = jnp.bfloat16

    def heads_in(w):        # (E_in, E_out[h-major]) -> (H, E_in, Dh)
        return w.reshape(E, H, Dh).transpose(1, 0, 2).astype(bf16)

    def heads_out(w):       # (E_in[h-major], E_out) -> (H, Dh, E_out)
        return w.reshape(H, Dh, E).astype(bf16)

    return [
        heads_in(wq_s),
        jnp.concatenate([heads_in(wk_s), heads_in(wv_s)], axis=0),
        heads_out(wo_s),
        heads_in(wq_c),
        jnp.concatenate([heads_in(wk_c), heads_in(wv_c)], axis=0),
        heads_out(wo_c),
        w1.astype(bf16), b1, w2.astype(bf16), b2,
        g1, be1, g2, be2, g3, be3,
    ]


# ------------------------------ pure-JAX reference ------------------------------

def reference(x, enc, src_padding_mask, params2d, num_heads):
    # Mirrors the kernel's bf16-at-the-MXU precision (f32 accumulation, f32 softmax
    # and layer-norm) so the comparison below is tight; removing the bf16 casts
    # gives the pure-f32 PyTorch forward.
    (wq_s, wk_s, wv_s, wo_s, wq_c, wk_c, wv_c, wo_c,
     w1, b1, w2, b2, g1, be1, g2, be2, g3, be3) = params2d
    N, T, E = x.shape
    S = enc.shape[1]
    H = num_heads
    Dh = E // H
    bf16 = jnp.bfloat16
    neg = jnp.float32(-1e30)
    fmask = jnp.where(jnp.tril(jnp.ones((T, T), bool)), 0.0, neg)[None, None]
    smask = jnp.where(src_padding_mask, 0.0, neg)[:, None, None, :]

    def ln(v, g, b, eps=1e-5):
        m = jnp.mean(v, axis=-1, keepdims=True)
        var = jnp.mean((v - m) ** 2, axis=-1, keepdims=True)
        return (v - m) / jnp.sqrt(var + eps) * g + b

    def mm(a, w):
        return jnp.dot(a.astype(bf16), w.astype(bf16),
                       preferred_element_type=jnp.float32)

    def mha(q_in, kv_in, wq, wk, wv, wo, add_mask):
        Tq, Tk = q_in.shape[1], kv_in.shape[1]
        q = mm(q_in, wq).reshape(N, Tq, H, Dh).transpose(0, 2, 1, 3) / math.sqrt(Dh)
        k = mm(kv_in, wk).reshape(N, Tk, H, Dh).transpose(0, 2, 1, 3)
        v = mm(kv_in, wv).reshape(N, Tk, H, Dh).transpose(0, 2, 1, 3)
        logits = jnp.einsum("nhqd,nhkd->nhqk", q.astype(bf16), k.astype(bf16),
                            preferred_element_type=jnp.float32) + add_mask
        p = jax.nn.softmax(logits, axis=-1)
        ctx = jnp.einsum("nhqk,nhkd->nhqd", p.astype(bf16), v.astype(bf16),
                         preferred_element_type=jnp.float32)
        ctx = ctx.transpose(0, 2, 1, 3).reshape(N, Tq, E)
        return mm(ctx, wo)

    x1 = ln(x + mha(x, x, wq_s, wk_s, wv_s, wo_s, fmask), g1, be1)
    x2 = ln(x1 + mha(x1, enc, wq_c, wk_c, wv_c, wo_c, smask), g2, be2)
    ff = mm(jnp.maximum(mm(x2, w1) + b1, 0.0), w2) + b2
    return ln(x2 + ff, g3, be3)


# ----------------------------------- main ----------------------------------------

if __name__ == "__main__":
    N, T, S, E, H, F = 2, 16, 8, 32, 4, 64
    TQ = 8
    Dh = E // H
    key = jax.random.PRNGKey(0)
    ks = jax.random.split(key, 12)

    def xavier(k, out_dim, in_dim):
        bound = math.sqrt(6.0 / (in_dim + out_dim))
        return jax.random.uniform(k, (out_dim, in_dim), jnp.float32, -bound, bound)

    # PyTorch-shaped raw parameters (out, in): single bias-free qkv projection per
    # attention and bias-free output projection (reference repo convention).
    W_qkv_self = xavier(ks[0], 3 * E, E)
    W_o_self = xavier(ks[1], E, E)
    W_qkv_cross = xavier(ks[2], 3 * E, E)
    W_o_cross = xavier(ks[3], E, E)
    W1 = xavier(ks[4], F, E)
    bf1 = jax.random.uniform(ks[5], (F,), jnp.float32, -0.1, 0.1)
    W2 = xavier(ks[6], E, F)
    bf2 = jax.random.uniform(ks[7], (E,), jnp.float32, -0.1, 0.1)

    # Head-grouped split of the fused qkv weights, transposed to (in_dim, out_dim).
    r_self = W_qkv_self.reshape(H, 3, Dh, E)
    wq_s = r_self[:, 0].reshape(E, E).T
    wk_s = r_self[:, 1].reshape(E, E).T
    wv_s = r_self[:, 2].reshape(E, E).T
    wo_s = W_o_self.T

    wq_c = W_qkv_cross[:E].T
    r_kv = W_qkv_cross[E:].reshape(H, 2, Dh, E)
    wk_c = r_kv[:, 0].reshape(E, E).T
    wv_c = r_kv[:, 1].reshape(E, E).T
    wo_c = W_o_cross.T

    params2d = [
        wq_s, wk_s, wv_s, wo_s,
        wq_c, wk_c, wv_c, wo_c,
        W1.T, bf1.reshape(1, F), W2.T, bf2.reshape(1, E),
        jnp.ones((1, E), jnp.float32), jnp.zeros((1, E), jnp.float32),   # layer_norm1
        jnp.ones((1, E), jnp.float32), jnp.zeros((1, E), jnp.float32),   # layer_norm2
        jnp.ones((1, E), jnp.float32), jnp.zeros((1, E), jnp.float32),   # layer_norm3
    ]
    kernel_params = prepare_kernel_params(params2d, H)

    x = jax.random.normal(ks[8], (N, T, E), jnp.float32)
    enc = jax.random.normal(ks[9], (N, S, E), jnp.float32)
    # Causal future-mask is generated in-kernel; only the src padding mask is passed.
    src_padding_mask = jnp.array(
        [[True] * S, [True] * (S - 2) + [False] * 2], dtype=bool)        # (N, S)

    out = jax.block_until_ready(
        transformer_decoder_block(x, enc, src_padding_mask, kernel_params, tq=TQ))

    ref = reference(x, enc, src_padding_mask, params2d, H)
    # Tolerance covers the approx softmax reciprocal + bf16 rounding differences.
    if not jnp.allclose(out, ref, atol=5e-2, rtol=5e-2):
        err = float(jnp.max(jnp.abs(out - ref)))
        raise SystemExit(f"mismatch vs reference (max abs err {err:.3e})")

    print("KERNEL_OK")
</pallas_src>

<mosaic_0001>
module attributes {stable_mosaic.version = 11 : i64} {
  func.func @decoder_block_kernel(%arg0: i32, %arg1: i32, %arg2: memref<1x8x32xf32, #tpu.memory_space<vmem>>, %arg3: memref<1x16x32xf32, #tpu.memory_space<vmem>>, %arg4: memref<1x8x32xf32, #tpu.memory_space<vmem>>, %arg5: memref<1x1x8xf32, #tpu.memory_space<vmem>>, %arg6: memref<4x32x8xbf16, #tpu.memory_space<vmem>>, %arg7: memref<8x32x8xbf16, #tpu.memory_space<vmem>>, %arg8: memref<4x8x32xbf16, #tpu.memory_space<vmem>>, %arg9: memref<4x32x8xbf16, #tpu.memory_space<vmem>>, %arg10: memref<8x32x8xbf16, #tpu.memory_space<vmem>>, %arg11: memref<4x8x32xbf16, #tpu.memory_space<vmem>>, %arg12: memref<32x64xbf16, #tpu.memory_space<vmem>>, %arg13: memref<1x64xf32, #tpu.memory_space<vmem>>, %arg14: memref<64x32xbf16, #tpu.memory_space<vmem>>, %arg15: memref<1x32xf32, #tpu.memory_space<vmem>>, %arg16: memref<1x32xf32, #tpu.memory_space<vmem>>, %arg17: memref<1x32xf32, #tpu.memory_space<vmem>>, %arg18: memref<1x32xf32, #tpu.memory_space<vmem>>, %arg19: memref<1x32xf32, #tpu.memory_space<vmem>>, %arg20: memref<1x32xf32, #tpu.memory_space<vmem>>, %arg21: memref<1x32xf32, #tpu.memory_space<vmem>>, %arg22: memref<1x8x32xf32, #tpu.memory_space<vmem>>) attributes {dimension_semantics = [#tpu.dimension_semantics<parallel>, #tpu.dimension_semantics<parallel>], iteration_bounds = array<i64: 2, 2>, scalar_prefetch = 0 : i64, scratch_operands = 0 : i64, tpu.core_type = #tpu.core_type<tc>, window_params = [{transform_indices = @transform_0, window_bounds = array<i64: 1, 8, 32>}, {transform_indices = @transform_1, window_bounds = array<i64: 1, 16, 32>}, {transform_indices = @transform_2, window_bounds = array<i64: 1, 8, 32>}, {transform_indices = @transform_3, window_bounds = array<i64: 1, 1, 8>}, {pipeline_mode = #tpu.pipeline_mode<synchronous>, transform_indices = @transform_4, window_bounds = array<i64: 4, 32, 8>}, {pipeline_mode = #tpu.pipeline_mode<synchronous>, transform_indices = @transform_5, window_bounds = array<i64: 8, 32, 8>}, {pipeline_mode = #tpu.pipeline_mode<synchronous>, transform_indices = @transform_6, window_bounds = array<i64: 4, 8, 32>}, {pipeline_mode = #tpu.pipeline_mode<synchronous>, transform_indices = @transform_7, window_bounds = array<i64: 4, 32, 8>}, {pipeline_mode = #tpu.pipeline_mode<synchronous>, transform_indices = @transform_8, window_bounds = array<i64: 8, 32, 8>}, {pipeline_mode = #tpu.pipeline_mode<synchronous>, transform_indices = @transform_9, window_bounds = array<i64: 4, 8, 32>}, {pipeline_mode = #tpu.pipeline_mode<synchronous>, transform_indices = @transform_10, window_bounds = array<i64: 32, 64>}, {pipeline_mode = #tpu.pipeline_mode<synchronous>, transform_indices = @transform_11, window_bounds = array<i64: 1, 64>}, {pipeline_mode = #tpu.pipeline_mode<synchronous>, transform_indices = @transform_12, window_bounds = array<i64: 64, 32>}, {pipeline_mode = #tpu.pipeline_mode<synchronous>, transform_indices = @transform_13, window_bounds = array<i64: 1, 32>}, {pipeline_mode = #tpu.pipeline_mode<synchronous>, transform_indices = @transform_14, window_bounds = array<i64: 1, 32>}, {pipeline_mode = #tpu.pipeline_mode<synchronous>, transform_indices = @transform_15, window_bounds = array<i64: 1, 32>}, {pipeline_mode = #tpu.pipeline_mode<synchronous>, transform_indices = @transform_16, window_bounds = array<i64: 1, 32>}, {pipeline_mode = #tpu.pipeline_mode<synchronous>, transform_indices = @transform_17, window_bounds = array<i64: 1, 32>}, {pipeline_mode = #tpu.pipeline_mode<synchronous>, transform_indices = @transform_18, window_bounds = array<i64: 1, 32>}, {pipeline_mode = #tpu.pipeline_mode<synchronous>, transform_indices = @transform_19, window_bounds = array<i64: 1, 32>}, {transform_indices = @transform_20, window_bounds = array<i64: 1, 8, 32>}]} {
    %c0 = arith.constant 0 : index
    %c0_0 = arith.constant 0 : index
    %c0_1 = arith.constant 0 : index
    %0 = vector.load %arg2[%c0, %c0_0, %c0_1] : memref<1x8x32xf32, #tpu.memory_space<vmem>>, vector<1x8x32xf32>
    %1 = vector.shape_cast %0 : vector<1x8x32xf32> to vector<8x32xf32>
    %c0_2 = arith.constant 0 : index
    %c0_3 = arith.constant 0 : index
    %c0_4 = arith.constant 0 : index
    %2 = vector.load %arg3[%c0_2, %c0_3, %c0_4] : memref<1x16x32xf32, #tpu.memory_space<vmem>>, vector<1x16x32xf32>
    %3 = vector.shape_cast %2 : vector<1x16x32xf32> to vector<16x32xf32>
    %c0_5 = arith.constant 0 : index
    %c0_6 = arith.constant 0 : index
    %c0_7 = arith.constant 0 : index
    %4 = vector.load %arg4[%c0_5, %c0_6, %c0_7] : memref<1x8x32xf32, #tpu.memory_space<vmem>>, vector<1x8x32xf32>
    %5 = vector.shape_cast %4 : vector<1x8x32xf32> to vector<8x32xf32>
    %c0_8 = arith.constant 0 : index
    %c0_9 = arith.constant 0 : index
    %c0_10 = arith.constant 0 : index
    %6 = vector.load %arg5[%c0_8, %c0_9, %c0_10] : memref<1x1x8xf32, #tpu.memory_space<vmem>>, vector<1x1x8xf32>
    %7 = vector.shape_cast %6 : vector<1x1x8xf32> to vector<1x8xf32>
    %c0_11 = arith.constant 0 : index
    %c0_12 = arith.constant 0 : index
    %8 = vector.load %arg16[%c0_11, %c0_12] : memref<1x32xf32, #tpu.memory_space<vmem>>, vector<1x32xf32>
    %c0_13 = arith.constant 0 : index
    %c0_14 = arith.constant 0 : index
    %9 = vector.load %arg17[%c0_13, %c0_14] : memref<1x32xf32, #tpu.memory_space<vmem>>, vector<1x32xf32>
    %c0_15 = arith.constant 0 : index
    %c0_16 = arith.constant 0 : index
    %10 = vector.load %arg18[%c0_15, %c0_16] : memref<1x32xf32, #tpu.memory_space<vmem>>, vector<1x32xf32>
    %c0_17 = arith.constant 0 : index
    %c0_18 = arith.constant 0 : index
    %11 = vector.load %arg19[%c0_17, %c0_18] : memref<1x32xf32, #tpu.memory_space<vmem>>, vector<1x32xf32>
    %c0_19 = arith.constant 0 : index
    %c0_20 = arith.constant 0 : index
    %12 = vector.load %arg20[%c0_19, %c0_20] : memref<1x32xf32, #tpu.memory_space<vmem>>, vector<1x32xf32>
    %c0_21 = arith.constant 0 : index
    %c0_22 = arith.constant 0 : index
    %13 = vector.load %arg21[%c0_21, %c0_22] : memref<1x32xf32, #tpu.memory_space<vmem>>, vector<1x32xf32>
    %c0_23 = arith.constant 0 : index
    %c0_24 = arith.constant 0 : index
    %14 = vector.load %arg13[%c0_23, %c0_24] : memref<1x64xf32, #tpu.memory_space<vmem>>, vector<1x64xf32>
    %c0_25 = arith.constant 0 : index
    %c0_26 = arith.constant 0 : index
    %15 = vector.load %arg15[%c0_25, %c0_26] : memref<1x32xf32, #tpu.memory_space<vmem>>, vector<1x32xf32>
    %c8_i32 = arith.constant 8 : i32
    %16 = arith.muli %arg1, %c8_i32 : i32
    %17 = tpu.iota {dimensions = array<i32: 0>} : vector<8x16xi32>
    %18 = vector.broadcast %16 : i32 to vector<8x16xi32>
    %19 = arith.addi %18, %17 : vector<8x16xi32>
    %20 = tpu.iota {dimensions = array<i32: 1>} : vector<8x16xi32>
    %21 = arith.cmpi sle, %20, %19 : vector<8x16xi32>
    %cst = arith.constant 0.000000e+00 : f32
    %cst_27 = arith.constant -1.000000e+30 : f32
    %22 = vector.broadcast %cst : f32 to vector<8x16xf32>
    %23 = vector.broadcast %cst_27 : f32 to vector<8x16xf32>
    %24 = arith.select %21, %22, %23 : vector<8x16xi1>, vector<8x16xf32>
    %c0_28 = arith.constant 0 : index
    %c0_29 = arith.constant 0 : index
    %c0_30 = arith.constant 0 : index
    %25 = vector.load %arg6[%c0_28, %c0_29, %c0_30] : memref<4x32x8xbf16, #tpu.memory_space<vmem>>, vector<4x32x8xbf16>
    %c0_31 = arith.constant 0 : index
    %c0_32 = arith.constant 0 : index
    %c0_33 = arith.constant 0 : index
    %26 = vector.load %arg7[%c0_31, %c0_32, %c0_33] : memref<8x32x8xbf16, #tpu.memory_space<vmem>>, vector<8x32x8xbf16>
    %c0_34 = arith.constant 0 : index
    %c0_35 = arith.constant 0 : index
    %c0_36 = arith.constant 0 : index
    %27 = vector.load %arg8[%c0_34, %c0_35, %c0_36] : memref<4x8x32xbf16, #tpu.memory_space<vmem>>, vector<4x8x32xbf16>
    %28 = arith.truncf %1 : vector<8x32xf32> to vector<8x32xbf16>
    %29 = vector.shape_cast %28 : vector<8x32xbf16> to vector<1x8x32xbf16>
    %30 = vector.shape_cast %29 : vector<1x8x32xbf16> to vector<1x8x32xbf16>
    %31 = vector.broadcast %30 : vector<1x8x32xbf16> to vector<4x8x32xbf16>
    %32 = arith.truncf %3 : vector<16x32xf32> to vector<16x32xbf16>
    %33 = vector.shape_cast %32 : vector<16x32xbf16> to vector<1x16x32xbf16>
    %34 = vector.shape_cast %33 : vector<1x16x32xbf16> to vector<1x16x32xbf16>
    %35 = vector.broadcast %34 : vector<1x16x32xbf16> to vector<8x16x32xbf16>
    "tpu.trace_start"() <{level = 10 : i32, message = "hqe,hed->hqd"}> : () -> ()
    %cst_37 = arith.constant dense<0.000000e+00> : vector<4x8x8xf32>
    %36 = tpu.matmul %31, %25, %cst_37 {dimension_numbers = #tpu.dot_dimension_numbers<[2], [1], [1], [2], [0, 0, 0, 1, 1, 2], [0], [0]>} : vector<4x8x32xbf16>, vector<4x32x8xbf16>, vector<4x8x8xf32> -> vector<4x8x8xf32>
    "tpu.trace_stop"() : () -> ()
    "tpu.trace_start"() <{level = 10 : i32, message = "hke,hed->hkd"}> : () -> ()
    %cst_38 = arith.constant dense<0.000000e+00> : vector<8x16x8xf32>
    %37 = tpu.matmul %35, %26, %cst_38 {dimension_numbers = #tpu.dot_dimension_numbers<[2], [1], [1], [2], [0, 0, 0, 1, 1, 2], [0], [0]>} : vector<8x16x32xbf16>, vector<8x32x8xbf16>, vector<8x16x8xf32> -> vector<8x16x8xf32>
    "tpu.trace_stop"() : () -> ()
    %38 = vector.extract_strided_slice %37 {offsets = [0, 0, 0], sizes = [4, 16, 8], strides = [1, 1, 1]} : vector<8x16x8xf32> to vector<4x16x8xf32>
    %39 = vector.extract_strided_slice %37 {offsets = [4, 0, 0], sizes = [4, 16, 8], strides = [1, 1, 1]} : vector<8x16x8xf32> to vector<4x16x8xf32>
    %cst_39 = arith.constant 0.353553385 : f32
    %40 = vector.broadcast %cst_39 : f32 to vector<4x8x8xf32>
    %41 = arith.mulf %36, %40 : vector<4x8x8xf32>
    %42 = arith.truncf %41 : vector<4x8x8xf32> to vector<4x8x8xbf16>
    %43 = arith.truncf %38 : vector<4x16x8xf32> to vector<4x16x8xbf16>
    "tpu.trace_start"() <{level = 10 : i32, message = "hqd,hkd->hqk"}> : () -> ()
    %cst_40 = arith.constant dense<0.000000e+00> : vector<4x8x16xf32>
    %44 = tpu.matmul %42, %43, %cst_40 {dimension_numbers = #tpu.dot_dimension_numbers<[2], [2], [1], [1], [0, 0, 0, 1, 1, 1], [0], [0]>} : vector<4x8x8xbf16>, vector<4x16x8xbf16>, vector<4x8x16xf32> -> vector<4x8x16xf32>
    "tpu.trace_stop"() : () -> ()
    %45 = vector.shape_cast %24 : vector<8x16xf32> to vector<1x8x16xf32>
    %46 = vector.broadcast %45 : vector<1x8x16xf32> to vector<4x8x16xf32>
    %47 = arith.addf %44, %46 : vector<4x8x16xf32>
    %cst_41 = arith.constant dense<0xFF800000> : vector<4x8xf32>
    %48 = vector.multi_reduction <maximumf>, %47, %cst_41 [2] : vector<4x8x16xf32> to vector<4x8xf32>
    %49 = vector.shape_cast %48 : vector<4x8xf32> to vector<4x8x1xf32>
    %50 = vector.broadcast %49 : vector<4x8x1xf32> to vector<4x8x16xf32>
    %51 = arith.subf %47, %50 : vector<4x8x16xf32>
    %52 = math.exp %51 : vector<4x8x16xf32>
    %cst_42 = arith.constant dense<0.000000e+00> : vector<4x8xf32>
    %53 = vector.multi_reduction <add>, %52, %cst_42 [2] : vector<4x8x16xf32> to vector<4x8xf32>
    %54 = vector.shape_cast %53 : vector<4x8xf32> to vector<4x8x1xf32>
    %55 = tpu.reciprocal %54 {approx = true} : vector<4x8x1xf32> -> vector<4x8x1xf32>
    %56 = vector.broadcast %55 : vector<4x8x1xf32> to vector<4x8x16xf32>
    %57 = arith.mulf %52, %56 : vector<4x8x16xf32>
    %58 = arith.truncf %57 : vector<4x8x16xf32> to vector<4x8x16xbf16>
    %59 = arith.truncf %39 : vector<4x16x8xf32> to vector<4x16x8xbf16>
    "tpu.trace_start"() <{level = 10 : i32, message = "hqk,hkd->hqd"}> : () -> ()
    %cst_43 = arith.constant dense<0.000000e+00> : vector<4x8x8xf32>
    %60 = tpu.matmul %58, %59, %cst_43 {dimension_numbers = #tpu.dot_dimension_numbers<[2], [1], [1], [2], [0, 0, 0, 1, 1, 2], [0], [0]>} : vector<4x8x16xbf16>, vector<4x16x8xbf16>, vector<4x8x8xf32> -> vector<4x8x8xf32>
    "tpu.trace_stop"() : () -> ()
    %61 = arith.truncf %60 : vector<4x8x8xf32> to vector<4x8x8xbf16>
    "tpu.trace_start"() <{level = 10 : i32, message = "hqd,hde->hqe"}> : () -> ()
    %cst_44 = arith.constant dense<0.000000e+00> : vector<4x8x32xf32>
    %62 = tpu.matmul %61, %27, %cst_44 {dimension_numbers = #tpu.dot_dimension_numbers<[2], [1], [1], [2], [0, 0, 0, 1, 1, 2], [0], [0]>} : vector<4x8x8xbf16>, vector<4x8x32xbf16>, vector<4x8x32xf32> -> vector<4x8x32xf32>
    "tpu.trace_stop"() : () -> ()
    %cst_45 = arith.constant dense<0.000000e+00> : vector<8x32xf32>
    %63 = vector.multi_reduction <add>, %62, %cst_45 [0] : vector<4x8x32xf32> to vector<8x32xf32>
    %64 = arith.addf %1, %63 : vector<8x32xf32>
    %cst_46 = arith.constant dense<0.000000e+00> : vector<8xf32>
    %65 = vector.multi_reduction <add>, %64, %cst_46 [1] : vector<8x32xf32> to vector<8xf32>
    %66 = vector.shape_cast %65 : vector<8xf32> to vector<8x1xf32>
    %cst_47 = arith.constant 3.200000e+01 : f32
    %67 = vector.broadcast %cst_47 : f32 to vector<8x1xf32>
    %68 = arith.divf %66, %67 : vector<8x1xf32>
    %69 = vector.broadcast %68 : vector<8x1xf32> to vector<8x32xf32>
    %70 = arith.subf %64, %69 : vector<8x32xf32>
    %71 = arith.mulf %70, %70 : vector<8x32xf32>
    %cst_48 = arith.constant dense<0.000000e+00> : vector<8xf32>
    %72 = vector.multi_reduction <add>, %71, %cst_48 [1] : vector<8x32xf32> to vector<8xf32>
    %73 = vector.shape_cast %72 : vector<8xf32> to vector<8x1xf32>
    %cst_49 = arith.constant 3.200000e+01 : f32
    %74 = vector.broadcast %cst_49 : f32 to vector<8x1xf32>
    %75 = arith.divf %73, %74 : vector<8x1xf32>
    %76 = vector.broadcast %68 : vector<8x1xf32> to vector<8x32xf32>
    %77 = arith.subf %64, %76 : vector<8x32xf32>
    %cst_50 = arith.constant 9.99999974E-6 : f32
    %78 = vector.broadcast %cst_50 : f32 to vector<8x1xf32>
    %79 = arith.addf %75, %78 : vector<8x1xf32>
    %80 = math.rsqrt %79 : vector<8x1xf32>
    %81 = vector.broadcast %80 : vector<8x1xf32> to vector<8x32xf32>
    %82 = arith.mulf %77, %81 : vector<8x32xf32>
    %83 = vector.broadcast %8 : vector<1x32xf32> to vector<8x32xf32>
    %84 = arith.mulf %82, %83 : vector<8x32xf32>
    %85 = vector.broadcast %9 : vector<1x32xf32> to vector<8x32xf32>
    %86 = arith.addf %84, %85 : vector<8x32xf32>
    %c0_51 = arith.constant 0 : index
    %c0_52 = arith.constant 0 : index
    %c0_53 = arith.constant 0 : index
    %87 = vector.load %arg9[%c0_51, %c0_52, %c0_53] : memref<4x32x8xbf16, #tpu.memory_space<vmem>>, vector<4x32x8xbf16>
    %c0_54 = arith.constant 0 : index
    %c0_55 = arith.constant 0 : index
    %c0_56 = arith.constant 0 : index
    %88 = vector.load %arg10[%c0_54, %c0_55, %c0_56] : memref<8x32x8xbf16, #tpu.memory_space<vmem>>, vector<8x32x8xbf16>
    %c0_57 = arith.constant 0 : index
    %c0_58 = arith.constant 0 : index
    %c0_59 = arith.constant 0 : index
    %89 = vector.load %arg11[%c0_57, %c0_58, %c0_59] : memref<4x8x32xbf16, #tpu.memory_space<vmem>>, vector<4x8x32xbf16>
    %90 = arith.truncf %86 : vector<8x32xf32> to vector<8x32xbf16>
    %91 = vector.shape_cast %90 : vector<8x32xbf16> to vector<1x8x32xbf16>
    %92 = vector.shape_cast %91 : vector<1x8x32xbf16> to vector<1x8x32xbf16>
    %93 = vector.broadcast %92 : vector<1x8x32xbf16> to vector<4x8x32xbf16>
    %94 = arith.truncf %5 : vector<8x32xf32> to vector<8x32xbf16>
    %95 = vector.shape_cast %94 : vector<8x32xbf16> to vector<1x8x32xbf16>
    %96 = vector.shape_cast %95 : vector<1x8x32xbf16> to vector<1x8x32xbf16>
    %97 = vector.broadcast %96 : vector<1x8x32xbf16> to vector<8x8x32xbf16>
    "tpu.trace_start"() <{level = 10 : i32, message = "hqe,hed->hqd"}> : () -> ()
    %cst_60 = arith.constant dense<0.000000e+00> : vector<4x8x8xf32>
    %98 = tpu.matmul %93, %87, %cst_60 {dimension_numbers = #tpu.dot_dimension_numbers<[2], [1], [1], [2], [0, 0, 0, 1, 1, 2], [0], [0]>} : vector<4x8x32xbf16>, vector<4x32x8xbf16>, vector<4x8x8xf32> -> vector<4x8x8xf32>
    "tpu.trace_stop"() : () -> ()
    "tpu.trace_start"() <{level = 10 : i32, message = "hke,hed->hkd"}> : () -> ()
    %cst_61 = arith.constant dense<0.000000e+00> : vector<8x8x8xf32>
    %99 = tpu.matmul %97, %88, %cst_61 {dimension_numbers = #tpu.dot_dimension_numbers<[2], [1], [1], [2], [0, 0, 0, 1, 1, 2], [0], [0]>} : vector<8x8x32xbf16>, vector<8x32x8xbf16>, vector<8x8x8xf32> -> vector<8x8x8xf32>
    "tpu.trace_stop"() : () -> ()
    %100 = vector.extract_strided_slice %99 {offsets = [0, 0, 0], sizes = [4, 8, 8], strides = [1, 1, 1]} : vector<8x8x8xf32> to vector<4x8x8xf32>
    %101 = vector.extract_strided_slice %99 {offsets = [4, 0, 0], sizes = [4, 8, 8], strides = [1, 1, 1]} : vector<8x8x8xf32> to vector<4x8x8xf32>
    %cst_62 = arith.constant 0.353553385 : f32
    %102 = vector.broadcast %cst_62 : f32 to vector<4x8x8xf32>
    %103 = arith.mulf %98, %102 : vector<4x8x8xf32>
    %104 = arith.truncf %103 : vector<4x8x8xf32> to vector<4x8x8xbf16>
    %105 = arith.truncf %100 : vector<4x8x8xf32> to vector<4x8x8xbf16>
    "tpu.trace_start"() <{level = 10 : i32, message = "hqd,hkd->hqk"}> : () -> ()
    %cst_63 = arith.constant dense<0.000000e+00> : vector<4x8x8xf32>
    %106 = tpu.matmul %104, %105, %cst_63 {dimension_numbers = #tpu.dot_dimension_numbers<[2], [2], [1], [1], [0, 0, 0, 1, 1, 1], [0], [0]>} : vector<4x8x8xbf16>, vector<4x8x8xbf16>, vector<4x8x8xf32> -> vector<4x8x8xf32>
    "tpu.trace_stop"() : () -> ()
    %107 = vector.shape_cast %7 : vector<1x8xf32> to vector<1x1x8xf32>
    %108 = vector.broadcast %107 : vector<1x1x8xf32> to vector<4x8x8xf32>
    %109 = arith.addf %106, %108 : vector<4x8x8xf32>
    %cst_64 = arith.constant dense<0xFF800000> : vector<4x8xf32>
    %110 = vector.multi_reduction <maximumf>, %109, %cst_64 [2] : vector<4x8x8xf32> to vector<4x8xf32>
    %111 = vector.shape_cast %110 : vector<4x8xf32> to vector<4x8x1xf32>
    %112 = vector.broadcast %111 : vector<4x8x1xf32> to vector<4x8x8xf32>
    %113 = arith.subf %109, %112 : vector<4x8x8xf32>
    %114 = math.exp %113 : vector<4x8x8xf32>
    %cst_65 = arith.constant dense<0.000000e+00> : vector<4x8xf32>
    %115 = vector.multi_reduction <add>, %114, %cst_65 [2] : vector<4x8x8xf32> to vector<4x8xf32>
    %116 = vector.shape_cast %115 : vector<4x8xf32> to vector<4x8x1xf32>
    %117 = tpu.reciprocal %116 {approx = true} : vector<4x8x1xf32> -> vector<4x8x1xf32>
    %118 = vector.broadcast %117 : vector<4x8x1xf32> to vector<4x8x8xf32>
    %119 = arith.mulf %114, %118 : vector<4x8x8xf32>
    %120 = arith.truncf %119 : vector<4x8x8xf32> to vector<4x8x8xbf16>
    %121 = arith.truncf %101 : vector<4x8x8xf32> to vector<4x8x8xbf16>
    "tpu.trace_start"() <{level = 10 : i32, message = "hqk,hkd->hqd"}> : () -> ()
    %cst_66 = arith.constant dense<0.000000e+00> : vector<4x8x8xf32>
    %122 = tpu.matmul %120, %121, %cst_66 {dimension_numbers = #tpu.dot_dimension_numbers<[2], [1], [1], [2], [0, 0, 0, 1, 1, 2], [0], [0]>} : vector<4x8x8xbf16>, vector<4x8x8xbf16>, vector<4x8x8xf32> -> vector<4x8x8xf32>
    "tpu.trace_stop"() : () -> ()
    %123 = arith.truncf %122 : vector<4x8x8xf32> to vector<4x8x8xbf16>
    "tpu.trace_start"() <{level = 10 : i32, message = "hqd,hde->hqe"}> : () -> ()
    %cst_67 = arith.constant dense<0.000000e+00> : vector<4x8x32xf32>
    %124 = tpu.matmul %123, %89, %cst_67 {dimension_numbers = #tpu.dot_dimension_numbers<[2], [1], [1], [2], [0, 0, 0, 1, 1, 2], [0], [0]>} : vector<4x8x8xbf16>, vector<4x8x32xbf16>, vector<4x8x32xf32> -> vector<4x8x32xf32>
    "tpu.trace_stop"() : () -> ()
    %cst_68 = arith.constant dense<0.000000e+00> : vector<8x32xf32>
    %125 = vector.multi_reduction <add>, %124, %cst_68 [0] : vector<4x8x32xf32> to vector<8x32xf32>
    %126 = arith.addf %86, %125 : vector<8x32xf32>
    %cst_69 = arith.constant dense<0.000000e+00> : vector<8xf32>
    %127 = vector.multi_reduction <add>, %126, %cst_69 [1] : vector<8x32xf32> to vector<8xf32>
    %128 = vector.shape_cast %127 : vector<8xf32> to vector<8x1xf32>
    %cst_70 = arith.constant 3.200000e+01 : f32
    %129 = vector.broadcast %cst_70 : f32 to vector<8x1xf32>
    %130 = arith.divf %128, %129 : vector<8x1xf32>
    %131 = vector.broadcast %130 : vector<8x1xf32> to vector<8x32xf32>
    %132 = arith.subf %126, %131 : vector<8x32xf32>
    %133 = arith.mulf %132, %132 : vector<8x32xf32>
    %cst_71 = arith.constant dense<0.000000e+00> : vector<8xf32>
    %134 = vector.multi_reduction <add>, %133, %cst_71 [1] : vector<8x32xf32> to vector<8xf32>
    %135 = vector.shape_cast %134 : vector<8xf32> to vector<8x1xf32>
    %cst_72 = arith.constant 3.200000e+01 : f32
    %136 = vector.broadcast %cst_72 : f32 to vector<8x1xf32>
    %137 = arith.divf %135, %136 : vector<8x1xf32>
    %138 = vector.broadcast %130 : vector<8x1xf32> to vector<8x32xf32>
    %139 = arith.subf %126, %138 : vector<8x32xf32>
    %cst_73 = arith.constant 9.99999974E-6 : f32
    %140 = vector.broadcast %cst_73 : f32 to vector<8x1xf32>
    %141 = arith.addf %137, %140 : vector<8x1xf32>
    %142 = math.rsqrt %141 : vector<8x1xf32>
    %143 = vector.broadcast %142 : vector<8x1xf32> to vector<8x32xf32>
    %144 = arith.mulf %139, %143 : vector<8x32xf32>
    %145 = vector.broadcast %10 : vector<1x32xf32> to vector<8x32xf32>
    %146 = arith.mulf %144, %145 : vector<8x32xf32>
    %147 = vector.broadcast %11 : vector<1x32xf32> to vector<8x32xf32>
    %148 = arith.addf %146, %147 : vector<8x32xf32>
    %149 = arith.truncf %148 : vector<8x32xf32> to vector<8x32xbf16>
    %c0_74 = arith.constant 0 : index
    %c0_75 = arith.constant 0 : index
    %150 = vector.load %arg12[%c0_74, %c0_75] : memref<32x64xbf16, #tpu.memory_space<vmem>>, vector<32x64xbf16>
    %cst_76 = arith.constant dense<0.000000e+00> : vector<8x64xf32>
    %151 = tpu.matmul %149, %150, %cst_76 {dimension_numbers = #tpu.dot_dimension_numbers<[1], [0], [0], [1], [0, 0, 1, 1], [], []>} : vector<8x32xbf16>, vector<32x64xbf16>, vector<8x64xf32> -> vector<8x64xf32>
    %152 = vector.broadcast %14 : vector<1x64xf32> to vector<8x64xf32>
    %153 = arith.addf %151, %152 : vector<8x64xf32>
    %cst_77 = arith.constant 0.000000e+00 : f32
    %154 = vector.broadcast %cst_77 : f32 to vector<8x64xf32>
    %155 = arith.maximumf %153, %154 : vector<8x64xf32>
    %156 = arith.truncf %155 : vector<8x64xf32> to vector<8x64xbf16>
    %c0_78 = arith.constant 0 : index
    %c0_79 = arith.constant 0 : index
    %157 = vector.load %arg14[%c0_78, %c0_79] : memref<64x32xbf16, #tpu.memory_space<vmem>>, vector<64x32xbf16>
    %cst_80 = arith.constant dense<0.000000e+00> : vector<8x32xf32>
    %158 = tpu.matmul %156, %157, %cst_80 {dimension_numbers = #tpu.dot_dimension_numbers<[1], [0], [0], [1], [0, 0, 1, 1], [], []>} : vector<8x64xbf16>, vector<64x32xbf16>, vector<8x32xf32> -> vector<8x32xf32>
    %159 = vector.broadcast %15 : vector<1x32xf32> to vector<8x32xf32>
    %160 = arith.addf %158, %159 : vector<8x32xf32>
    %161 = arith.addf %148, %160 : vector<8x32xf32>
    %cst_81 = arith.constant dense<0.000000e+00> : vector<8xf32>
    %162 = vector.multi_reduction <add>, %161, %cst_81 [1] : vector<8x32xf32> to vector<8xf32>
    %163 = vector.shape_cast %162 : vector<8xf32> to vector<8x1xf32>
    %cst_82 = arith.constant 3.200000e+01 : f32
    %164 = vector.broadcast %cst_82 : f32 to vector<8x1xf32>
    %165 = arith.divf %163, %164 : vector<8x1xf32>
    %166 = vector.broadcast %165 : vector<8x1xf32> to vector<8x32xf32>
    %167 = arith.subf %161, %166 : vector<8x32xf32>
    %168 = arith.mulf %167, %167 : vector<8x32xf32>
    %cst_83 = arith.constant dense<0.000000e+00> : vector<8xf32>
    %169 = vector.multi_reduction <add>, %168, %cst_83 [1] : vector<8x32xf32> to vector<8xf32>
    %170 = vector.shape_cast %169 : vector<8xf32> to vector<8x1xf32>
    %cst_84 = arith.constant 3.200000e+01 : f32
    %171 = vector.broadcast %cst_84 : f32 to vector<8x1xf32>
    %172 = arith.divf %170, %171 : vector<8x1xf32>
    %173 = vector.broadcast %165 : vector<8x1xf32> to vector<8x32xf32>
    %174 = arith.subf %161, %173 : vector<8x32xf32>
    %cst_85 = arith.constant 9.99999974E-6 : f32
    %175 = vector.broadcast %cst_85 : f32 to vector<8x1xf32>
    %176 = arith.addf %172, %175 : vector<8x1xf32>
    %177 = math.rsqrt %176 : vector<8x1xf32>
    %178 = vector.broadcast %177 : vector<8x1xf32> to vector<8x32xf32>
    %179 = arith.mulf %174, %178 : vector<8x32xf32>
    %180 = vector.broadcast %12 : vector<1x32xf32> to vector<8x32xf32>
    %181 = arith.mulf %179, %180 : vector<8x32xf32>
    %182 = vector.broadcast %13 : vector<1x32xf32> to vector<8x32xf32>
    %183 = arith.addf %181, %182 : vector<8x32xf32>
    %c0_86 = arith.constant 0 : index
    %c0_87 = arith.constant 0 : index
    %c0_88 = arith.constant 0 : index
    %184 = vector.load %arg22[%c0_86, %c0_87, %c0_88] : memref<1x8x32xf32, #tpu.memory_space<vmem>>, vector<1x8x32xf32>
    %185 = vector.shape_cast %184 : vector<1x8x32xf32> to vector<8x32xf32>
    %186 = vector.shape_cast %183 : vector<8x32xf32> to vector<1x8x32xf32>
    tpu.vector_store %arg22[%c0_86, %c0_87, %c0_88], %186 {strides = array<i32>} : memref<1x8x32xf32, #tpu.memory_space<vmem>>, vector<1x8x32xf32>,
    return
  }
  func.func @transform_0(%arg0: i32, %arg1: i32) -> (i32, i32, i32) {
    %c0_i32 = arith.constant 0 : i32
    %c0_i32_0 = arith.constant 0 : i32
    return %arg0, %arg1, %c0_i32 : i32, i32, i32
  }
  func.func @transform_1(%arg0: i32, %arg1: i32) -> (i32, i32, i32) {
    %c0_i32 = arith.constant 0 : i32
    %c0_i32_0 = arith.constant 0 : i32
    %c0_i32_1 = arith.constant 0 : i32
    return %arg0, %c0_i32, %c0_i32_0 : i32, i32, i32
  }
  func.func @transform_2(%arg0: i32, %arg1: i32) -> (i32, i32, i32) {
    %c0_i32 = arith.constant 0 : i32
    %c0_i32_0 = arith.constant 0 : i32
    %c0_i32_1 = arith.constant 0 : i32
    return %arg0, %c0_i32, %c0_i32_0 : i32, i32, i32
  }
  func.func @transform_3(%arg0: i32, %arg1: i32) -> (i32, i32, i32) {
    %c0_i32 = arith.constant 0 : i32
    %c0_i32_0 = arith.constant 0 : i32
    %c0_i32_1 = arith.constant 0 : i32
    return %arg0, %c0_i32, %c0_i32_0 : i32, i32, i32
  }
  func.func @transform_4(%arg0: i32, %arg1: i32) -> (i32, i32, i32) {
    %c0_i32 = arith.constant 0 : i32
    %c0_i32_0 = arith.constant 0 : i32
    %c0_i32_1 = arith.constant 0 : i32
    %c0_i32_2 = arith.constant 0 : i32
    return %c0_i32, %c0_i32_0, %c0_i32_1 : i32, i32, i32
  }
  func.func @transform_5(%arg0: i32, %arg1: i32) -> (i32, i32, i32) {
    %c0_i32 = arith.constant 0 : i32
    %c0_i32_0 = arith.constant 0 : i32
    %c0_i32_1 = arith.constant 0 : i32
    %c0_i32_2 = arith.constant 0 : i32
    return %c0_i32, %c0_i32_0, %c0_i32_1 : i32, i32, i32
  }
  func.func @transform_6(%arg0: i32, %arg1: i32) -> (i32, i32, i32) {
    %c0_i32 = arith.constant 0 : i32
    %c0_i32_0 = arith.constant 0 : i32
    %c0_i32_1 = arith.constant 0 : i32
    %c0_i32_2 = arith.constant 0 : i32
    return %c0_i32, %c0_i32_0, %c0_i32_1 : i32, i32, i32
  }
  func.func @transform_7(%arg0: i32, %arg1: i32) -> (i32, i32, i32) {
    %c0_i32 = arith.constant 0 : i32
    %c0_i32_0 = arith.constant 0 : i32
    %c0_i32_1 = arith.constant 0 : i32
    %c0_i32_2 = arith.constant 0 : i32
    return %c0_i32, %c0_i32_0, %c0_i32_1 : i32, i32, i32
  }
  func.func @transform_8(%arg0: i32, %arg1: i32) -> (i32, i32, i32) {
    %c0_i32 = arith.constant 0 : i32
    %c0_i32_0 = arith.constant 0 : i32
    %c0_i32_1 = arith.constant 0 : i32
    %c0_i32_2 = arith.constant 0 : i32
    return %c0_i32, %c0_i32_0, %c0_i32_1 : i32, i32, i32
  }
  func.func @transform_9(%arg0: i32, %arg1: i32) -> (i32, i32, i32) {
    %c0_i32 = arith.constant 0 : i32
    %c0_i32_0 = arith.constant 0 : i32
    %c0_i32_1 = arith.constant 0 : i32
    %c0_i32_2 = arith.constant 0 : i32
    return %c0_i32, %c0_i32_0, %c0_i32_1 : i32, i32, i32
  }
  func.func @transform_10(%arg0: i32, %arg1: i32) -> (i32, i32) {
    %c0_i32 = arith.constant 0 : i32
    %c0_i32_0 = arith.constant 0 : i32
    %c0_i32_1 = arith.constant 0 : i32
    return %c0_i32, %c0_i32_0 : i32, i32
  }
  func.func @transform_11(%arg0: i32, %arg1: i32) -> (i32, i32) {
    %c0_i32 = arith.constant 0 : i32
    %c0_i32_0 = arith.constant 0 : i32
    %c0_i32_1 = arith.constant 0 : i32
    return %c0_i32, %c0_i32_0 : i32, i32
  }
  func.func @transform_12(%arg0: i32, %arg1: i32) -> (i32, i32) {
    %c0_i32 = arith.constant 0 : i32
    %c0_i32_0 = arith.constant 0 : i32
    %c0_i32_1 = arith.constant 0 : i32
    return %c0_i32, %c0_i32_0 : i32, i32
  }
  func.func @transform_13(%arg0: i32, %arg1: i32) -> (i32, i32) {
    %c0_i32 = arith.constant 0 : i32
    %c0_i32_0 = arith.constant 0 : i32
    %c0_i32_1 = arith.constant 0 : i32
    return %c0_i32, %c0_i32_0 : i32, i32
  }
  func.func @transform_14(%arg0: i32, %arg1: i32) -> (i32, i32) {
    %c0_i32 = arith.constant 0 : i32
    %c0_i32_0 = arith.constant 0 : i32
    %c0_i32_1 = arith.constant 0 : i32
    return %c0_i32, %c0_i32_0 : i32, i32
  }
  func.func @transform_15(%arg0: i32, %arg1: i32) -> (i32, i32) {
    %c0_i32 = arith.constant 0 : i32
    %c0_i32_0 = arith.constant 0 : i32
    %c0_i32_1 = arith.constant 0 : i32
    return %c0_i32, %c0_i32_0 : i32, i32
  }
  func.func @transform_16(%arg0: i32, %arg1: i32) -> (i32, i32) {
    %c0_i32 = arith.constant 0 : i32
    %c0_i32_0 = arith.constant 0 : i32
    %c0_i32_1 = arith.constant 0 : i32
    return %c0_i32, %c0_i32_0 : i32, i32
  }
  func.func @transform_17(%arg0: i32, %arg1: i32) -> (i32, i32) {
    %c0_i32 = arith.constant 0 : i32
    %c0_i32_0 = arith.constant 0 : i32
    %c0_i32_1 = arith.constant 0 : i32
    return %c0_i32, %c0_i32_0 : i32, i32
  }
  func.func @transform_18(%arg0: i32, %arg1: i32) -> (i32, i32) {
    %c0_i32 = arith.constant 0 : i32
    %c0_i32_0 = arith.constant 0 : i32
    %c0_i32_1 = arith.constant 0 : i32
    return %c0_i32, %c0_i32_0 : i32, i32
  }
  func.func @transform_19(%arg0: i32, %arg1: i32) -> (i32, i32) {
    %c0_i32 = arith.constant 0 : i32
    %c0_i32_0 = arith.constant 0 : i32
    %c0_i32_1 = arith.constant 0 : i32
    return %c0_i32, %c0_i32_0 : i32, i32
  }
  func.func @transform_20(%arg0: i32, %arg1: i32) -> (i32, i32, i32) {
    %c0_i32 = arith.constant 0 : i32
    %c0_i32_0 = arith.constant 0 : i32
    return %arg0, %arg1, %c0_i32 : i32, i32, i32
  }
}

</mosaic_0001>

<bundles_post_ra>
// kernel: tpu_custom_call.1
= control target key start
LH: loop header
LB: loop body
LE: loop exit
PB: predicated region body
PF: predicated region fallthrough
CT: control target
= control target key end

     0   :  { %s5381_s0 = inlined_call_operand.vmem [shape: f32[2,16,32], index: 0, kind: input, shape index: {}]   ;;  %s5382_s1 = inlined_call_operand.vmem [shape: f32[2,16,32], index: 1, kind: input, shape index: {}]   ;;  %s5383_s2 = inlined_call_operand.vmem [shape: f32[2,8,32], index: 2, kind: input, shape index: {}]   ;;  %s5384_s3 = inlined_call_operand.vmem [shape: f32[2,1,8], index: 3, kind: input, shape index: {}]   ;;  %s5385_s4 = inlined_call_operand.vmem [shape: bf16[4,32,8], index: 4, kind: input, shape index: {}]   ;;  %s5386_s5 = inlined_call_operand.vmem [shape: bf16[8,32,8], index: 5, kind: input, shape index: {}]   ;;  %s5387_s6 = inlined_call_operand.vmem [shape: bf16[4,8,32], index: 6, kind: input, shape index: {}]   ;;  %s5388_s7 = inlined_call_operand.vmem [shape: bf16[4,32,8], index: 7, kind: input, shape index: {}]   ;;  %s5389_s8 = inlined_call_operand.vmem [shape: bf16[8,32,8], index: 8, kind: input, shape index: {}]   ;;  %s5390_s9 = inlined_call_operand.vmem [shape: bf16[4,8,32], index: 9, kind: input, shape index: {}]   ;;  %s5391_s10 = inlined_call_operand.vmem [shape: bf16[32,64], index: 10, kind: input, shape index: {}]   ;;  %s5392_s11 = inlined_call_operand.vmem [shape: f32[1,64], index: 11, kind: input, shape index: {}]   ;;  %s5393_s12 = inlined_call_operand.vmem [shape: bf16[64,32], index: 12, kind: input, shape index: {}]   ;;  %s5394_s13 = inlined_call_operand.vmem [shape: f32[1,32], index: 13, kind: input, shape index: {}]   ;;  %s5395_s14 = inlined_call_operand.vmem [shape: f32[1,32], index: 14, kind: input, shape index: {}]   ;;  %s5396_s15 = inlined_call_operand.vmem [shape: f32[1,32], index: 15, kind: input, shape index: {}]   ;;  %s5397_s16 = inlined_call_operand.vmem [shape: f32[1,32], index: 16, kind: input, shape index: {}]   ;;  %s5398_s17 = inlined_call_operand.vmem [shape: f32[1,32], index: 17, kind: input, shape index: {}]   ;;  %s5399_s18 = inlined_call_operand.vmem [shape: f32[1,32], index: 18, kind: input, shape index: {}]   ;;  %s5400_s19 = inlined_call_operand.vmem [shape: f32[1,32], index: 19, kind: input, shape index: {}]   ;;  %s5401_s20 = inlined_call_operand.hbm [shape: f32[2,16,32], index: 20, kind: output, shape index: {}]  }
   0x1   :  { %5413 = sst [smem:[#allocation14_spill]] %s5381_s0 }
   0x2   :  { %5414 = sst [smem:[#allocation15_spill]] %s5382_s1 }
   0x3   :  { %5415 = sst [smem:[#allocation16_spill]] %s5383_s2 }
   0x4   :  { %5416 = sst [smem:[#allocation17_spill]] %s5384_s3 }
   0x5   :  { %5417 = sst [smem:[#allocation18_spill]] %s5385_s4 }
   0x6   :  { %5418 = sst [smem:[#allocation19_spill]] %s5386_s5 }
   0x7   :  { %5419 = sst [smem:[#allocation20_spill]] %s5387_s6 }
   0x8   :  { %5420 = sst [smem:[#allocation21_spill]] %s5388_s7 }
   0x9   :  { %5421 = sst [smem:[#allocation22_spill]] %s5399_s18 }
   0xa   :  { %5422 = sst [smem:[#allocation23_spill]] %s5400_s19 }
   0xb   :  { %5423 = sst [smem:[#allocation24_spill]] %s5401_s20 }
   0xc   :  { %25 = vsyncpa [#allocation3], 0 }
   0xd   :  { %27 = vsyncpa [#allocation3 + $0x1], 0  ;;  %s4704_s1 = smov 0   ;;  %s4706_s22 = smov 0  }
   0xe   :  { %s4708_s23 = smov 0   ;;  %s4710_s24 = smov 0  }
   0xf   :  { %s4712_s2 = smov 0   ;;  %s4714_s25 = smov 0  }
  0x10   :  { %s4716_s3 = smov 0   ;;  %s4718_s26 = smov 0  }
  0x11 LB: > { %5424 = sst [smem:[#allocation5_spill]] %s4565_s1  ;;  %s3718_s27 = sadd.s32 4294967295, %s4593_s26   ;;  %s4593_s26 = sphi %s4718_s26, %s33_s26   ;;  %s4589_s3 = sphi %s4716_s3, %s5455_s3   ;;  %s4585_s25 = sphi %s4714_s25, %s5454_s25   ;;  %s4581_s2 = sphi %s4712_s2, %s5453_s2   ;;  %s4577_s24 = sphi %s4710_s24, %s5452_s24   ;;  %s4573_s23 = sphi %s4708_s23, %s5451_s23   ;;  %s4569_s22 = sphi %s4706_s22, %s5457_s22   ;;  %s4565_s1 = sphi %s4704_s1, %s5456_s1  }
  0x12   : > { %5425 = sst [smem:[#allocation6_spill]] %s4573_s23  ;;  %s3719_s28 = sadd.s32 4294967294, %s4593_s26  }
  0x13   : > { %5426 = sst [smem:[#allocation7_spill]] %s4585_s25  ;;  %s42_s4 = sadd.s32 1, %s4585_s25 }
  0x14   : > { %5427 = sst [smem:[#allocation8_spill]] %s4589_s3  ;;  %p43_p0 = scmp.ge.s32.totalorder %s42_s4, 2 }
  0x15   : > { %5428 = sst [smem:[#allocation9_spill]] %s4593_s26  ;;  %s45_s29 = sadd.s32 1, %s4589_s3 }
  0x16   : > { %p506_p1 = scmp.ne.s32.totalorder %s4573_s23, %s4569_s22  ;;  %p507_p2 = scmp.eq.s32.totalorder %s3718_s27, 3 }
  0x17   : > { %s5459_s4 = smov (%p43_p0, %s42_s4), 0  ;;  %s5461_s29 = smov (!%p43_p0, %s45_s29), %s4589_s3 }
  0x18   : > { %5429 = sst [smem:[#allocation10_spill]] %s5459_s4  ;;  %s492_s30 = ssub.s32 %s4585_s25, %s5459_s4 }
  0x19   : > { %p4755_p3 = por %p507_p2, %p506_p1  ;;  %p47_p4 = scmp.ge.s32.totalorder %s5461_s29, 2 }
  0x1a   : > { %p512_p5 = scmp.ne.s32.totalorder %s4569_s22, %s4565_s1  ;;  %p513_p6 = scmp.eq.s32.totalorder %s3719_s28, 3 }
  0x1b   : > { %p3722_p7 = scmp.ge.s32.totalorder %s4593_s26, 1  ;;  %s5463_s29 = smov (%p47_p4, %s5461_s29), 0 }
  0x1c   : > { %5431 = sst [smem:[#allocation11_spill]] %s5463_s29  ;;  %p4764_p8 = por %p513_p6, %p512_p5 }
  0x1d   : > { %p611_p9 = scmp.lt.s32.totalorder %s4593_s26, 5  ;;  %s491_s27 = ssub.s32 %s4589_s3, %s5463_s29 }
  0x1e   : > { %s5432_s21 = scalar_select %p4764_p8, 1, 0 }
  0x1f   : > { %s496_s20 = sadd.s32 1, %s4573_s23  ;;  %s493_s19 = sor.u32 %s492_s30, %s491_s27 }
  0x20   : > { %5433 = sst [smem:[#allocation12_spill]] %s5432_s21  ;;  %p612_p10 = pnand %p3722_p7, %p611_p9 }
  0x21   : > { %p494_p11 = scmp.eq.s32.totalorder %s493_s19, 0  ;;  %s5435_s28 = sld [smem:[#allocation18_spill]] (!%p612_p10)  ;;  %v4595_v1 = vmov (!%p612_p10), 0.0   ;;  %vm4596_vm0 = vmmov (!%p612_p10), 0   ;;  %vm793_vm1 = vcmask (!%p612_p10), 261120   ;;  %vm1432_vm2 = vcmask (!%p612_p10), 64512  }
  0x22   : > { %615 = sbr.rel (%p612_p10) target bundleno = 3864 (0xf18), region = 100  ;;  %3977 = vmatprep.subr.bf16.mxu0 (!%p612_p10), %v4595_v1  ;;  %3985 = vmatprep.subr.bf16.mxu1 (!%p612_p10), %v4595_v1  ;;  %p684_p12 = scmp.lt.s32.totalorder (!%p612_p10), %s4581_s2, 1  ;;  %vm1617_vm4 = vcmask (!%p612_p10), 130048   ;;  %vm1849_vm5 = vcmask (!%p612_p10), 1043456   ;;  %vm3518_vm6 = vcmask (!%p612_p10), 523264  }
  0x23   : > { %s4773_s4 = scalar_select %p494_p11, %s4573_s23, %s496_s20  }
  0x24   : > { %3981 = vmatprep.mubr.msk.bf16.mxu0 (!%p612_p10), %vm4596_vm0, %v4595_v1  ;;  %p686_p13 = scmp.lt.s32.totalorder (!%p612_p10), %s4577_s24, 1  ;;  %3989 = vmatprep.mubr.msk.bf16.mxu1 (!%p612_p10), %vm4596_vm0, %v4595_v1  ;;  %s5436_s3 = sld [smem:[#allocation14_spill]] (!%p612_p10) }
  0x25   : > { %5434 = sst [smem:[#allocation13_spill]] %s4773_s4  ;;  %s5438_s5 = sld [smem:[#allocation19_spill]] (!%p612_p10) }
  0x26   : > { %s3729_s18 = sshll.u32 (!%p612_p10), %s4577_s24, 3  ;;  %s5439_s6 = sld [smem:[#allocation20_spill]] (!%p612_p10) }
  0x27   : > { %v4407_v0 = vld [vmem:[%s5435_s28] sm:$0xff] (!%p612_p10)   ;;  %v4408_v2 = vld [vmem:[%s5435_s28 + $0x10] sm:$0xff] (!%p612_p10)   ;;  %v4409_v3 = vld [vmem:[%s5435_s28 + $0x8] sm:$0xff] (!%p612_p10)   ;;  %s5440_s7 = sld [smem:[#allocation21_spill]] (!%p612_p10)  ;;  %s681_s21 = sand.u32 (!%p612_p10), 1, %s4569_s22  }
  0x28   : > { %3978 = vmatpush3.bf16.msra.mxu0 (!%p612_p10), %v4407_v0  ;;  %3986 = vmatpush3.bf16.msra.mxu1 (!%p612_p10), %v4408_v2  ;;  %v4410_v4 = vld [vmem:[%s5435_s28 + $0x18] sm:$0xff] (!%p612_p10)   ;;  %v4411_v5 = vld [vmem:[%s5435_s28 + $0x20] sm:$0xff] (!%p612_p10)   ;;  %v4412_v7 = vld [vmem:[%s5435_s28 + $0x30] sm:$0xff] (!%p612_p10)   ;;  %s5443_s25 = sld [smem:[#allocation22_spill]] (!%p612_p10) }
  0x29   : > { %3979 = vmatprep.subr.bf16.mxu0 %v4595_v1  ;;  %3987 = vmatprep.subr.bf16.mxu1 %v4595_v1  ;;  %s4798_s29 = scalar_select %p684_p12, %s4581_s2, 1  ;;  %v4413_v9 = vld [vmem:[%s5435_s28 + $0x28] sm:$0xff]   ;;  %v4414_v10 = vld [vmem:[%s5435_s28 + $0x38] sm:$0xff]  }
  0x2a   : > { %s687_s27 = scalar_select %p686_p13, %s4577_s24, 1 }
  0x2b   : > { %s3724_s30 = sshll.u32 %s4798_s29, 1  ;;  %s3848_s23 = sshll.u32 %s4798_s29, 4  ;;  %v4415_v11 = vld [vmem:[%s5438_s5] sm:$0xff]   ;;  %v4416_v12 = vld [vmem:[%s5438_s5 + $0x10] sm:$0xff]   ;;  %v4417_v15 = vld [vmem:[%s5438_s5 + $0x8] sm:$0xff]  }
  0x2c   : > { %3980 = vmatpush3.bf16.msra.mxu0 %v4409_v3  ;;  %3988 = vmatpush3.bf16.msra.mxu1 %v4410_v4  ;;  %s689_s19 = sadd.s32 %s3724_s30, %s687_s27  ;;  %s5437_s30 = sld [smem:[#allocation15_spill]]  ;;  %v4418_v16 = vld [vmem:[%s5438_s5 + $0x18] sm:$0xff]   ;;  %v4419_v17 = vld [vmem:[%s5438_s5 + $0x20] sm:$0xff]   ;;  %v4420_v18 = vld [vmem:[%s5438_s5 + $0x30] sm:$0xff]  }
  0x2d   : > { %3993 = vmatprep.subr.bf16.mxu0 %v4595_v1  ;;  %s3725_s20 = sshll.u32 %s689_s19, 3  ;;  %4001 = vmatprep.subr.bf16.mxu1 %v4595_v1  ;;  %v4421_v20 = vld [vmem:[%s5438_s5 + $0x28] sm:$0xff]   ;;  %v4422_v21 = vld [vmem:[%s5438_s5 + $0x38] sm:$0xff]   ;;  %v4423_v22 = vld [vmem:[%s5438_s5 + $0x40] sm:$0xff]   ;;  %s3728_s1 = sshll.u32 %s4798_s29, 3 }
  0x2e   : > { %s691_s4 = scalar_lea.vmem %s5436_s3, %s3725_s20  ;;  %v4424_v23 = vld [vmem:[%s5438_s5 + $0x50] sm:$0xff]   ;;  %v4425_v24 = vld [vmem:[%s5438_s5 + $0x48] sm:$0xff]   ;;  %v4426_v25 = vld [vmem:[%s5438_s5 + $0x58] sm:$0xff]   ;;  %s5442_s3 = sld [smem:[#allocation17_spill]] }
  0x2f   : > { %v4810_v6 = vld [vmem:[%s691_s4] sm:$0xff]  ;;  %v4428_v27 = vld [vmem:[%s5438_s5 + $0x70] sm:$0xff]   ;;  %v4429_v28 = vld [vmem:[%s5438_s5 + $0x68] sm:$0xff]  }
  0x30   : > { %v779_v8 = vpack.c.bf16 %v4810_v6, %v4810_v6  ;;  %v4427_v26 = vld [vmem:[%s5438_s5 + $0x60] sm:$0xff]   ;;  %v4430_v29 = vld [vmem:[%s5438_s5 + $0x78] sm:$0xff]  }
  0x32   : > { %3982 = vmatmul.mubr.msk.bf16.vlgmr.msra.gmra.mrb[0].mxu0 %vm793_vm1, %v779_v8  ;;  %3990 = vmatmul.mubr.msk.bf16.vlgmr.msra.gmra.mrb[0].mxu1 %vm793_vm1, %v779_v8  ;;  %s696_s19 = scalar_lea.vmem %s5437_s30, %s3848_s23 }
  0x33   : > { %3994 = vmatpush3.bf16.msra.mxu0 %v4411_v5  ;;  %4002 = vmatpush3.bf16.msra.mxu1 %v4412_v7  ;;  %v706_v13 = vld [vmem:[%s696_s19] sm:$0xff]  ;;  %v707_v14 = vld [vmem:[%s696_s19 + $0x8] sm:$0xff] }
  0x34   : > { %3995 = vmatprep.subr.bf16.mxu0 %v4595_v1  ;;  %4003 = vmatprep.subr.bf16.mxu1 %v4595_v1  ;;  %v780_v19 = vpack.c.bf16 %v707_v14, %v706_v13  ;;  %s703_s4 = scalar_lea.vmem %s5442_s3, %s4798_s29  ;;  %s5444_s3 = sld [smem:[#allocation23_spill]] }
  0x35   : > { %3997 = vmatprep.mubr.msk.bf16.mxu0 %vm4596_vm0, %v4595_v1  ;;  %4005 = vmatprep.mubr.msk.bf16.mxu1 %vm4596_vm0, %v4595_v1 }
  0x37   : > { %3996 = vmatpush3.bf16.msra.mxu0 %v4413_v9  ;;  %4004 = vmatpush3.bf16.msra.mxu1 %v4414_v10 }
  0x38   : > { %4009 = vmatprep.subr.bf16.mxu0 %v4595_v1  ;;  %4017 = vmatprep.subr.bf16.mxu1 %v4595_v1 }
  0x3a   : > { %3998 = vmatmul.mubr.msk.bf16.vlgmr.msra.gmra.mrb[4].mxu0 %vm793_vm1, %v779_v8  ;;  %4006 = vmatmul.mubr.msk.bf16.vlgmr.msra.gmra.mrb[4].mxu1 %vm793_vm1, %v779_v8 }
  0x3b   : > { %4010 = vmatpush3.bf16.msra.mxu0 %v4415_v11  ;;  %4018 = vmatpush3.bf16.msra.mxu1 %v4416_v12 }
  0x3c   : > { %4011 = vmatprep.subr.bf16.mxu0 %v4595_v1  ;;  %4019 = vmatprep.subr.bf16.mxu1 %v4595_v1 }
  0x3d   : > { %4013 = vmatprep.mubr.msk.bf16.mxu0 %vm4596_vm0, %v4595_v1  ;;  %4021 = vmatprep.mubr.msk.bf16.mxu1 %vm4596_vm0, %v4595_v1 }
  0x3f   : > { %4012 = vmatpush3.bf16.msra.mxu0 %v4417_v15  ;;  %4020 = vmatpush3.bf16.msra.mxu1 %v4418_v16 }
  0x40   : > { %4025 = vmatprep.subr.bf16.mxu0 %v4595_v1  ;;  %4033 = vmatprep.subr.bf16.mxu1 %v4595_v1 }
  0x42   : > { %4014 = vmatmul.mubr.msk.bf16.vlgmr.msra.gmra.mrb[8].mxu0 %vm793_vm1, %v780_v19  ;;  %4022 = vmatmul.mubr.msk.bf16.vlgmr.msra.gmra.mrb[8].mxu1 %vm793_vm1, %v780_v19 }
  0x43   : > { %4026 = vmatpush3.bf16.msra.mxu0 %v4419_v17  ;;  %4034 = vmatpush3.bf16.msra.mxu1 %v4420_v18 }
  0x44   : > { %4027 = vmatprep.subr.bf16.mxu0 %v4595_v1  ;;  %4035 = vmatprep.subr.bf16.mxu1 %v4595_v1 }
  0x45   : > { %4029 = vmatprep.mubr.msk.bf16.mxu0 %vm4596_vm0, %v4595_v1  ;;  %4037 = vmatprep.mubr.msk.bf16.mxu1 %vm4596_vm0, %v4595_v1 }
  0x47   : > { %4028 = vmatpush3.bf16.msra.mxu0 %v4421_v20  ;;  %4036 = vmatpush3.bf16.msra.mxu1 %v4422_v21 }
  0x48   : > { %4041 = vmatprep.subr.bf16.mxu0 %v4595_v1  ;;  %4049 = vmatprep.subr.bf16.mxu1 %v4595_v1 }
  0x4a   : > { %4030 = vmatmul.mubr.msk.bf16.vlgmr.msra.gmra.mrb[12].mxu0 %vm793_vm1, %v780_v19  ;;  %4038 = vmatmul.mubr.msk.bf16.vlgmr.msra.gmra.mrb[12].mxu1 %vm793_vm1, %v780_v19 }
  0x4b   : > { %4042 = vmatpush3.bf16.msra.mxu0 %v4423_v22  ;;  %4045 = vmatprep.mubr.msk.bf16.mxu0 %vm4596_vm0, %v4595_v1 }
  0x4c   : > { %4043 = vmatprep.subr.bf16.mxu0 %v4595_v1  ;;  %4053 = vmatprep.mubr.msk.bf16.mxu1 %vm4596_vm0, %v4595_v1 }
  0x4d   : > { %4050 = vmatpush3.bf16.msra.mxu1 %v4424_v23 }
  0x4e   : > { %4051 = vmatprep.subr.bf16.mxu1 %v4595_v1 }
  0x4f   : > { %4044 = vmatpush3.bf16.msra.mxu0 %v4425_v24 }
  0x50   : > { %4057 = vmatprep.subr.bf16.mxu0 %v4595_v1 }
  0x51   : > { %4052 = vmatpush3.bf16.msra.mxu1 %v4426_v25 }
  0x52   : > { %4046 = vmatmul.mubr.msk.bf16.vlgmr.msra.gmra.mrb[16].mxu0 %vm793_vm1, %v780_v19  ;;  %4065 = vmatprep.subr.bf16.mxu1 %v4595_v1 }
  0x53   : > { %4061 = vmatprep.mubr.msk.bf16.mxu0 %vm4596_vm0, %v4595_v1  ;;  %4058 = vmatpush3.bf16.msra.mxu0 %v4427_v26 }
  0x54   : > { %4054 = vmatmul.mubr.msk.bf16.vlgmr.msra.gmra.mrb[16].mxu1 %vm793_vm1, %v780_v19  ;;  %4059 = vmatprep.subr.bf16.mxu0 %v4595_v1 }
  0x55   : > { %4066 = vmatpush3.bf16.msra.mxu1 %v4428_v27  ;;  %4069 = vmatprep.mubr.msk.bf16.mxu1 %vm4596_vm0, %v4595_v1 }
  0x56   : > { %4067 = vmatprep.subr.bf16.mxu1 %v4595_v1 }
  0x57   : > { %4060 = vmatpush3.bf16.msra.mxu0 %v4429_v28 }
  0x58   : > { %4073 = vmatprep.subr.bf16.mxu0 %v4595_v1 }
  0x59   : > { %4068 = vmatpush3.bf16.msra.mxu1 %v4430_v29 }
  0x5a   : > { %4079 = vmatprep.subr.bf16.mxu1 %v4595_v1  ;;  %4062 = vmatmul.mubr.msk.bf16.vlgmr.msra.gmra.mrb[20].mxu0 %vm793_vm1, %v780_v19 }
  0x5b   : > { %4075 = vmatprep.mubr.msk.bf16.mxu0 %vm4596_vm0, %v4595_v1 }
  0x5c   : > { %4070 = vmatmul.mubr.msk.bf16.vlgmr.msra.gmra.mrb[20].mxu1 %vm793_vm1, %v780_v19 }
  0x5d   : > { %4081 = vmatprep.mubr.msk.bf16.mxu1 %vm4596_vm0, %v4595_v1 }
 0x105   : > { %v831_v30 = vpop.f32.mrb[0].mxu0  ;;  %v883_v31 = vpop.f32.mrb[0].mxu1 }
 0x106   : > { %v3983_v32 = vpop.f32.mrb[1].mxu0  ;;  %v3991_v33 = vpop.f32.mrb[1].mxu1  ;;  %v1420_v58 = vmul.f32 0.35355338, %v831_v30  ;;  %v1421_v59 = vmul.f32 0.35355338, %v883_v31 }
 0x107   : > { %v834_v34 = vpop.f32.mrb[2].mxu0  ;;  %v886_v35 = vpop.f32.mrb[2].mxu1 }
 0x108   : > { %v3984_v36 = vpop.f32.mrb[3].mxu0  ;;  %v3992_v37 = vpop.f32.mrb[3].mxu1  ;;  %v1424_v3 = vpack.c.bf16 %v1420_v58, %v1420_v58  ;;  %v1425_v4 = vpack.c.bf16 %v1421_v59, %v1421_v59 }
 0x109   : > { %v719_v36 = vlaneseq }
 0x10b   : > { %v720_v37 = vshrl.u32 %v719_v36, 7 }
 0x10d   : > { %v935_v38 = vpop.f32.mrb[4].mxu0  ;;  %v987_v39 = vpop.f32.mrb[4].mxu1 }
 0x10e   : > { %v3999_v40 = vpop.f32.mrb[5].mxu0  ;;  %v4007_v41 = vpop.f32.mrb[5].mxu1  ;;  %v1422_v12 = vmul.f32 0.35355338, %v935_v38  ;;  %v1423_v13 = vmul.f32 0.35355338, %v987_v39  ;;  %v721_v38 = vstv %s3729_s18 }
 0x10f   : > { %v938_v42 = vpop.f32.mrb[6].mxu0  ;;  %v990_v43 = vpop.f32.mrb[6].mxu1  ;;  %v722_v39 = vadd.s32 %v721_v38, %v720_v37  ;;  %v724_v40 = vand.u32 127, %v719_v36  ;;  %v4597_v41 = vmov -1e+30   ;;  %s5441_s18 = sld [smem:[#allocation16_spill]] }
 0x110   : > { %v4000_v44 = vpop.f32.mrb[7].mxu0  ;;  %v4008_v45 = vpop.f32.mrb[7].mxu1  ;;  %v1426_v14 = vpack.c.bf16 %v1422_v12, %v1422_v12  ;;  %v1427_v15 = vpack.c.bf16 %v1423_v13, %v1423_v13 }
 0x111   : > { %vm725_vm3 = vcmp.le.s32.totalorder %v724_v40, %v722_v39 }
 0x112   : > { %v726_v42 = vsel %vm725_vm3, 0.0, %v4597_v41 }
 0x115   : > { %v1042_v46 = vpop.f32.mrb[8].mxu0  ;;  %v1095_v47 = vpop.f32.mrb[8].mxu1  ;;  %s700_s26 = scalar_lea.vmem %s5441_s18, %s3728_s1  ;;  %s3723_s18 = sshll.u32 %s681_s21, 3 }
 0x116   : > { %v4015_v48 = vpop.f32.mrb[9].mxu0  ;;  %v4023_v49 = vpop.f32.mrb[9].mxu1  ;;  %s683_s29 = scalar_lea.vmem [#allocation2], %s3723_s18  ;;  %s4598_s18 = smov [#allocation2]  }
 0x117   : > { %v1045_v50 = vpop.f32.mrb[10].mxu0  ;;  %v1098_v51 = vpop.f32.mrb[10].mxu1  ;;  %s3607_s23 = sshll.u32 %s683_s29, 4  ;;  %s5329_s23 = int_to_ptr.vmem [resolvable:$true] %s3607_s23 }
 0x118   : > { %v1428_v52 = vpack.c.bf16 %v1045_v50, %v1042_v46  ;;  %v1429_v53 = vpack.c.bf16 %v1098_v51, %v1095_v47  ;;  %v4016_v54 = vpop.f32.mrb[11].mxu0  ;;  %v4024_v55 = vpop.f32.mrb[11].mxu1  ;;  %s4499_s19 = scalar_lea.vmem %s5329_s23, 128 }
 0x119   : > { %p4500_p0 = scmp.ne.s32.totalorder %s5329_s23, %s4499_s19 }
 0x11a   : > { %v1437_v56 = vsel %vm1432_vm2, %v1428_v52, 0  ;;  %v1483_v57 = vsel %vm1432_vm2, %v1429_v53, 0 }
 0x11b   : > { %4074 = vmatpush3.bf16.xpose.msra.mxu0 %v1437_v56  ;;  %4080 = vmatpush3.bf16.xpose.msra.mxu1 %v1483_v57  ;;  %p4501_p1 = pnand %p4500_p0, %p4755_p3 }
 0x11c   : > { %4085 = vmatprep.subr.bf16.mxu0 %v4595_v1  ;;  %4091 = vmatprep.subr.bf16.mxu1 %v4595_v1 }
 0x11d   : > { %v1148_v60 = vpop.f32.mrb[12].mxu0  ;;  %v1201_v61 = vpop.f32.mrb[12].mxu1  ;;  %p4502_p2 = pneg %p4501_p1 }
 0x11e   : > { %v4031_v62 = vpop.f32.mrb[13].mxu0  ;;  %v4039_v63 = vpop.f32.mrb[13].mxu1 }
 0x11f   : > { %v1151_v0 = vpop.f32.mrb[14].mxu0  ;;  %v1204_v2 = vpop.f32.mrb[14].mxu1 }
 0x120   : > { %v1430_v5 = vpack.c.bf16 %v1151_v0, %v1148_v60  ;;  %v1431_v7 = vpack.c.bf16 %v1204_v2, %v1201_v61  ;;  %v4032_v8 = vpop.f32.mrb[15].mxu0  ;;  %v4040_v9 = vpop.f32.mrb[15].mxu1 }
 0x122   : > { %v1529_v10 = vsel %vm1432_vm2, %v1430_v5, 0  ;;  %v1575_v11 = vsel %vm1432_vm2, %v1431_v7, 0  ;;  %4076 = vmatmul.mubr.msk.bf16.vlgmr.msra.gmra.mrb[24].mxu0 %vm1432_vm2, %v1424_v3  ;;  %4082 = vmatmul.mubr.msk.bf16.vlgmr.msra.gmra.mrb[24].mxu1 %vm1432_vm2, %v1425_v4 }
 0x123   : > { %4086 = vmatpush3.bf16.xpose.msra.mxu0 %v1529_v10  ;;  %4092 = vmatpush3.bf16.xpose.msra.mxu1 %v1575_v11 }
 0x124   : > { %4087 = vmatprep.mubr.msk.bf16.mxu0 %vm4596_vm0, %v4595_v1  ;;  %4093 = vmatprep.mubr.msk.bf16.mxu1 %vm4596_vm0, %v4595_v1 }
 0x125   : > { %4097 = vmatprep.subr.bf16.mxu0 %v4595_v1  ;;  %4103 = vmatprep.subr.bf16.mxu1 %v4595_v1  ;;  %v1254_v16 = vpop.f32.mrb[16].mxu0 }
 0x126   : > { %v4047_v17 = vpop.f32.mrb[17].mxu0 }
 0x127   : > { %v1257_v18 = vpop.f32.mrb[18].mxu0  ;;  %v1307_v19 = vpop.f32.mrb[16].mxu1 }
 0x128   : > { %v1666_v20 = vpack.c.bf16 %v1257_v18, %v1254_v16  ;;  %v4048_v21 = vpop.f32.mrb[19].mxu0  ;;  %v4055_v22 = vpop.f32.mrb[17].mxu1 }
 0x129   : > { %v1310_v23 = vpop.f32.mrb[18].mxu1 }
 0x12a   : > { %4088 = vmatmul.mubr.msk.bf16.vlgmr.msra.gmra.mrb[28].mxu0 %vm1432_vm2, %v1426_v14  ;;  %4094 = vmatmul.mubr.msk.bf16.vlgmr.msra.gmra.mrb[28].mxu1 %vm1432_vm2, %v1427_v15  ;;  %v1667_v24 = vpack.c.bf16 %v1310_v23, %v1307_v19  ;;  %v4056_v25 = vpop.f32.mrb[19].mxu1 }
 0x12b   : > { %4099 = vmatprep.mubr.msk.bf16.mxu0 %vm4596_vm0, %v4595_v1  ;;  %4105 = vmatprep.mubr.msk.bf16.mxu1 %vm4596_vm0, %v4595_v1 }
 0x12c   : > { %4098 = vmatpush3.bf16.msra.mxu0 %v1666_v20  ;;  %4104 = vmatpush3.bf16.msra.mxu1 %v1667_v24 }
 0x12d   : > { %4109 = vmatprep.subr.bf16.mxu0 %v4595_v1  ;;  %4115 = vmatprep.subr.bf16.mxu1 %v4595_v1  ;;  %v4953_v26 = vpop.f32.mrb[20].mxu0 }
 0x12e   : > { %v4063_v28 = vpop.f32.mrb[21].mxu0 }
 0x12f   : > { %v4955_v27 = vpop.f32.mrb[20].mxu1  ;;  %v4957_v30 = vpop.f32.mrb[22].mxu0 }
 0x130   : > { %v4071_v29 = vpop.f32.mrb[21].mxu1  ;;  %v1668_v32 = vpack.c.bf16 %v4957_v30, %v4953_v26  ;;  %v4064_v33 = vpop.f32.mrb[23].mxu0 }
 0x131   : > { %v4959_v31 = vpop.f32.mrb[22].mxu1 }
 0x132   : > { %v1669_v34 = vpack.c.bf16 %v4959_v31, %v4955_v27  ;;  %v4072_v35 = vpop.f32.mrb[23].mxu1  ;;  %v776_v27 = vld [vmem:[%s5439_s6 + $0x4] sm:$0xf] }
 0x133   : > { %v1897_v31 = vsel %vm1849_vm5, %v776_v27, 0 }
 0x1f5   : > { %v1473_v43 = vpop.f32.mrb[24].mxu0  ;;  %v1519_v44 = vpop.f32.mrb[24].mxu1 }
 0x1f6   : > { %v1474_v45 = vadd.f32 %v1473_v43, %v726_v42  ;;  %v4077_v46 = vpop.f32.mrb[25].mxu0  ;;  %v4083_v47 = vpop.f32.mrb[25].mxu1  ;;  %v1520_v50 = vadd.f32 %v1519_v44, %v726_v42 }
 0x1f7   : > { %v1476_v48 = vpop.f32.mrb[26].mxu0  ;;  %v1522_v49 = vpop.f32.mrb[26].mxu1 }
 0x1f8   : > { %v4078_v51 = vpop.f32.mrb[27].mxu0  ;;  %v4084_v52 = vpop.f32.mrb[27].mxu1  ;;  %v1618_v53 = vsel %vm1617_vm4, %v1474_v45, -inf  ;;  %v1621_v54 = vsel %vm1617_vm4, %v1520_v50, -inf }
 0x1f9   : > { %1619 = vmax.xlane.f32.xlu0 %v1618_v53  ;;  %v778_v51 = vld [vmem:[%s5439_s6 + $0xc] sm:$0xf] }
 0x1fd   : > { %v1611_v55 = vpop.f32.mrb[28].mxu1  ;;  %1622 = vmax.xlane.f32.xlu0 %v1621_v54  ;;  %v1565_v56 = vpop.f32.mrb[28].mxu0 }
 0x1fe   : > { %v1566_v57 = vadd.f32 %v1565_v56, %v726_v42  ;;  %v4089_v58 = vpop.f32.mrb[29].mxu0  ;;  %v4095_v59 = vpop.f32.mrb[29].mxu1  ;;  %v1612_v62 = vadd.f32 %v1611_v55, %v726_v42  ;;  %v775_v42 = vld [vmem:[%s5439_s6] sm:$0xf]  ;;  %v1989_v56 = vsel %vm1849_vm5, %v778_v51, 0 }
 0x1ff   : > { %v1568_v60 = vpop.f32.mrb[30].mxu0  ;;  %v1614_v61 = vpop.f32.mrb[30].mxu1  ;;  %v1851_v30 = vsel %vm1849_vm5, %v775_v42, 0 }
 0x200   : > { %v4090_v63 = vpop.f32.mrb[31].mxu0  ;;  %v4096_v0 = vpop.f32.mrb[31].mxu1  ;;  %v1624_v2 = vsel %vm1617_vm4, %v1566_v57, -inf  ;;  %v1627_v3 = vsel %vm1617_vm4, %v1612_v62, -inf }
 0x201   : > { %1625 = vmax.xlane.f32.xlu1 %v1624_v2 }
 0x205   : > { %1628 = vmax.xlane.f32.xlu1 %v1627_v3 }
 0x286   : > { %v1620_v4 = vpop.xlane.xlu0 %1619 }
 0x287   : > { %v1630_v5 = vsub.f32 %v1474_v45, %v1620_v4 }
 0x289   : > { %v1634_v7 = vmul.f32 1.442695, %v1630_v5 }
 0x28a   : > { %v1623_v8 = vpop.xlane.xlu0 %1622 }
 0x28b   : > { %4461 = vpow2.f32 %v1634_v7  ;;  %v1631_v9 = vsub.f32 %v1520_v50, %v1623_v8 }
 0x28d   : > { %v1636_v10 = vmul.f32 1.442695, %v1631_v9 }
 0x28e   : > { %v1626_v11 = vpop.xlane.xlu1 %1625 }
 0x28f   : > { %4463 = vpow2.f32 %v1636_v10  ;;  %v1632_v12 = vsub.f32 %v1566_v57, %v1626_v11 }
 0x291   : > { %v1638_v13 = vmul.f32 1.442695, %v1632_v12 }
 0x292   : > { %v1629_v14 = vpop.xlane.xlu1 %1628 }
 0x293   : > { %4465 = vpow2.f32 %v1638_v13  ;;  %v1633_v15 = vsub.f32 %v1612_v62, %v1629_v14 }
 0x295   : > { %v4462_v16 = vpop.eup %4461  ;;  %v1640_v17 = vmul.f32 1.442695, %v1633_v15 }
 0x296   : > { %v1642_v18 = vsel %vm1617_vm4, %v4462_v16, 0.0 }
 0x297   : > { %4467 = vpow2.f32 %v1640_v17  ;;  %1643 = vadd.xlane.f32.xlu0 %v1642_v18 }
 0x299   : > { %v4464_v19 = vpop.eup %4463 }
 0x29a   : > { %v1645_v20 = vsel %vm1617_vm4, %v4464_v19, 0.0 }
 0x29b   : > { %1646 = vadd.xlane.f32.xlu1 %v1645_v20 }
 0x29d   : > { %v4466_v21 = vpop.eup %4465 }
 0x29e   : > { %v1648_v22 = vsel %vm1617_vm4, %v4466_v21, 0.0 }
 0x29f   : > { %1649 = vadd.xlane.f32.xlu0 %v1648_v22 }
 0x2a1   : > { %v4468_v23 = vpop.eup %4467 }
 0x2a2   : > { %v1651_v24 = vsel %vm1617_vm4, %v4468_v23, 0.0 }
 0x2a3   : > { %1652 = vadd.xlane.f32.xlu1 %v1651_v24 }
 0x324   : > { %v1644_v25 = vpop.xlane.xlu0 %1643 }
 0x325   : > { %4469 = vrcp.f32 %v1644_v25 }
 0x328   : > { %v1647_v28 = vpop.xlane.xlu1 %1646 }
 0x329   : > { %4471 = vrcp.f32 %v1647_v28 }
 0x32c   : > { %v1650_v29 = vpop.xlane.xlu0 %1649 }
 0x32d   : > { %4473 = vrcp.f32 %v1650_v29 }
 0x32f   : > { %v4470_v33 = vpop.eup %4469 }
 0x330   : > { %v1658_v35 = vmul.f32 %v4470_v33, %v4462_v16  ;;  %v1653_v36 = vpop.xlane.xlu1 %1652 }
 0x331   : > { %4475 = vrcp.f32 %v1653_v36 }
 0x332   : > { %v1662_v37 = vpack.c.bf16 %v1658_v35, %v1658_v35 }
 0x333   : > { %v4472_v38 = vpop.eup %4471 }
 0x334   : > { %v1659_v39 = vmul.f32 %v4472_v38, %v4464_v19  ;;  %4100 = vmatmul.mubr.msk.bf16.vlgmr.msra.gmra.mrb[32].mxu0 %vm1617_vm4, %v1662_v37 }
 0x335   : > { %4110 = vmatpush3.bf16.msra.mxu0 %v1668_v32  ;;  %4111 = vmatprep.mubr.msk.bf16.mxu0 %vm4596_vm0, %v4595_v1 }
 0x336   : > { %v1663_v40 = vpack.c.bf16 %v1659_v39, %v1659_v39  ;;  %4121 = vmatprep.subr.bf16.mxu0 %v4595_v1 }
 0x337   : > { %v4474_v41 = vpop.eup %4473 }
 0x338   : > { %v1660_v43 = vmul.f32 %v4474_v41, %v4466_v21  ;;  %4106 = vmatmul.mubr.msk.bf16.vlgmr.msra.gmra.mrb[32].mxu1 %vm1617_vm4, %v1663_v40 }
 0x339   : > { %4116 = vmatpush3.bf16.msra.mxu1 %v1669_v34  ;;  %4117 = vmatprep.mubr.msk.bf16.mxu1 %vm4596_vm0, %v4595_v1  ;;  %v777_v34 = vld [vmem:[%s5439_s6 + $0x8] sm:$0xf] }
 0x33a   : > { %v1664_v26 = vpack.c.bf16 %v1660_v43, %v1660_v43  ;;  %4127 = vmatprep.subr.bf16.mxu1 %v4595_v1  ;;  %v1943_v49 = vsel %vm1849_vm5, %v777_v34, 0  ;;  %v4431_v43 = vld [vmem:[%s5440_s7] sm:$0xff]  }
 0x33b   : > { %v4476_v32 = vpop.eup %4475 }
 0x33c   : > { %v1661_v44 = vmul.f32 %v4476_v32, %v4468_v23  ;;  %4112 = vmatmul.mubr.msk.bf16.vlgmr.msra.gmra.mrb[36].mxu0 %vm1617_vm4, %v1664_v26  ;;  %v4432_v26 = vld [vmem:[%s5440_s7 + $0x10] sm:$0xff]  }
 0x33d   : > { %4122 = vmatpush3.bf16.msra.mxu0 %v1851_v30  ;;  %4123 = vmatprep.mubr.msk.bf16.mxu0 %vm4596_vm0, %v4595_v1  ;;  %v4434_v30 = vld [vmem:[%s5440_s7 + $0x18] sm:$0xff]  }
 0x33e   : > { %v1665_v45 = vpack.c.bf16 %v1661_v44, %v1661_v44  ;;  %4133 = vmatprep.subr.bf16.mxu0 %v4595_v1 }
 0x340   : > { %4118 = vmatmul.mubr.msk.bf16.vlgmr.msra.gmra.mrb[36].mxu1 %vm1617_vm4, %v1665_v45 }
 0x341   : > { %4129 = vmatprep.mubr.msk.bf16.mxu1 %vm4596_vm0, %v4595_v1  ;;  %4128 = vmatpush3.bf16.msra.mxu1 %v1897_v31  ;;  %v3778_v31 = vld [vmem:[%s5395_s14] ss:$0 sm:$0xff] }
 0x342   : > { %4139 = vmatprep.subr.bf16.mxu1 %v4595_v1 }
 0x407   : > { %v1707_v46 = vpop.f32.mrb[32].mxu0 }
 0x408   : > { %v1842_v47 = vpack.c.bf16 %v1707_v46, %v1707_v46  ;;  %v4101_v48 = vpop.f32.mrb[33].mxu0  ;;  %v3779_v46 = vld [vmem:[%s5396_s15] ss:$0 sm:$0xff] }
 0x409   : > { %v1710_v50 = vpop.f32.mrb[34].mxu0 }
 0x40a   : > { %v4102_v52 = vpop.f32.mrb[35].mxu0  ;;  %4124 = vmatmul.mubr.msk.bf16.vlgmr.msra.gmra.mrb[40].mxu0 %vm1432_vm2, %v1842_v47  ;;  %v4436_v50 = vld [vmem:[%s5440_s7 + $0x30] sm:$0xff]  }
 0x40b   : > { %v1750_v53 = vpop.f32.mrb[32].mxu1  ;;  %4134 = vmatpush3.bf16.msra.mxu0 %v1943_v49  ;;  %4135 = vmatprep.mubr.msk.bf16.mxu0 %vm4596_vm0, %v4595_v1  ;;  %v4435_v49 = vld [vmem:[%s5440_s7 + $0x20] sm:$0xff]   ;;  %v4437_v52 = vld [vmem:[%s5440_s7 + $0x28] sm:$0xff]  }
 0x40c   : > { %v1843_v54 = vpack.c.bf16 %v1750_v53, %v1750_v53  ;;  %v4107_v55 = vpop.f32.mrb[33].mxu1  ;;  %4145 = vmatprep.subr.bf16.mxu0 %v4595_v1  ;;  %v4438_v53 = vld [vmem:[%s5440_s7 + $0x38] sm:$0xff]  }
 0x40d   : > { %v1753_v57 = vpop.f32.mrb[34].mxu1  ;;  %v4440_v55 = vld [vmem:[%s5389_s8 + $0x10] sm:$0xff]  }
 0x40e   : > { %v4108_v58 = vpop.f32.mrb[35].mxu1  ;;  %4130 = vmatmul.mubr.msk.bf16.vlgmr.msra.gmra.mrb[40].mxu1 %vm1432_vm2, %v1843_v54  ;;  %v4439_v54 = vld [vmem:[%s5389_s8] sm:$0xff]   ;;  %v4441_v57 = vld [vmem:[%s5389_s8 + $0x8] sm:$0xff]  }
 0x40f   : > { %v1793_v59 = vpop.f32.mrb[36].mxu0  ;;  %4140 = vmatpush3.bf16.msra.mxu1 %v1989_v56  ;;  %4141 = vmatprep.mubr.msk.bf16.mxu1 %vm4596_vm0, %v4595_v1  ;;  %v708_v56 = vld [vmem:[%s700_s26] sm:$0xff]  ;;  %v4442_v58 = vld [vmem:[%s5389_s8 + $0x18] sm:$0xff]   ;;  %s3844_s26 = sshll.u32 %s4581_s2, 1  ;;  %s5445_s2 = sld [smem:[#allocation24_spill]] }
 0x410   : > { %v1844_v60 = vpack.c.bf16 %v1793_v59, %v1793_v59  ;;  %v4113_v61 = vpop.f32.mrb[37].mxu0  ;;  %4153 = vmatprep.subr.bf16.mxu1 %v4595_v1  ;;  %v2120_v59 = vpack.c.bf16 %v708_v56, %v708_v56  ;;  %s3603_s30 = sadd.s32 %s4577_s24, %s3844_s26  ;;  %s3592_s26 = scalar_lea.sflag [#allocation3], %s681_s21 }
 0x411   : > { %v1796_v62 = vpop.f32.mrb[38].mxu0  ;;  %v4444_v61 = vld [vmem:[%s5389_s8 + $0x30] sm:$0xff]  }
 0x412   : > { %v4114_v63 = vpop.f32.mrb[39].mxu0  ;;  %4136 = vmatmul.mubr.msk.bf16.vlgmr.msra.gmra.mrb[44].mxu0 %vm1432_vm2, %v1844_v60  ;;  %v4443_v60 = vld [vmem:[%s5389_s8 + $0x20] sm:$0xff]   ;;  %v4445_v62 = vld [vmem:[%s5389_s8 + $0x28] sm:$0xff]  }
 0x413   : > { %v1836_v0 = vpop.f32.mrb[36].mxu1  ;;  %4149 = vmatprep.mubr.msk.bf16.mxu0 %vm4596_vm0, %v4595_v1  ;;  %4146 = vmatpush3.bf16.msra.mxu0 %v4431_v43  ;;  %v4446_v63 = vld [vmem:[%s5389_s8 + $0x38] sm:$0xff]  }
 0x414   : > { %v1845_v2 = vpack.c.bf16 %v1836_v0, %v1836_v0  ;;  %v4119_v3 = vpop.f32.mrb[37].mxu1  ;;  %4147 = vmatprep.subr.bf16.mxu0 %v4595_v1  ;;  %v4447_v0 = vld [vmem:[%s5389_s8 + $0x40] sm:$0xff]  }
 0x415   : > { %v1839_v4 = vpop.f32.mrb[38].mxu1  ;;  %v4449_v3 = vld [vmem:[%s5389_s8 + $0x48] sm:$0xff]  }
 0x416   : > { %v4120_v5 = vpop.f32.mrb[39].mxu1  ;;  %4142 = vmatmul.mubr.msk.bf16.vlgmr.msra.gmra.mrb[44].mxu1 %vm1432_vm2, %v1845_v2  ;;  %v4448_v2 = vld [vmem:[%s5389_s8 + $0x50] sm:$0xff]   ;;  %v4450_v4 = vld [vmem:[%s5389_s8 + $0x58] sm:$0xff]  }
 0x417   : > { %4157 = vmatprep.mubr.msk.bf16.mxu1 %vm4596_vm0, %v4595_v1  ;;  %4154 = vmatpush3.bf16.msra.mxu1 %v4432_v26  ;;  %v4451_v5 = vld [vmem:[%s5389_s8 + $0x60] sm:$0xff]  }
 0x418   : > { %4155 = vmatprep.subr.bf16.mxu1 %v4595_v1 }
 0x41b   : > { %4156 = vmatpush3.bf16.msra.mxu1 %v4434_v30 }
 0x41c   : > { %4169 = vmatprep.subr.bf16.mxu1 %v4595_v1 }
 0x4dd   : > { %v1887_v7 = vpop.f32.mrb[40].mxu0 }
 0x4de   : > { %v4125_v8 = vpop.f32.mrb[41].mxu0  ;;  %v2031_v12 = vsel %vm793_vm1, %v1887_v7, 0.0  ;;  %v4452_v7 = vld [vmem:[%s5389_s8 + $0x70] sm:$0xff]  }
 0x4df   : > { %v1890_v9 = vpop.f32.mrb[42].mxu0  ;;  %v4453_v8 = vld [vmem:[%s5389_s8 + $0x68] sm:$0xff]  }
 0x4e0   : > { %v4126_v10 = vpop.f32.mrb[43].mxu0  ;;  %v4454_v9 = vld [vmem:[%s5389_s8 + $0x78] sm:$0xff]  }
 0x4e1   : > { %v1933_v11 = vpop.f32.mrb[40].mxu1 }
 0x4e2   : > { %v2032_v13 = vsel %vm793_vm1, %v1933_v11, 0.0  ;;  %v4131_v14 = vpop.f32.mrb[41].mxu1 }
 0x4e3   : > { %v2033_v15 = vadd.f32 %v2032_v13, %v2031_v12  ;;  %v1936_v16 = vpop.f32.mrb[42].mxu1 }
 0x4e4   : > { %v4132_v17 = vpop.f32.mrb[43].mxu1 }
 0x4e5   : > { %v1979_v18 = vpop.f32.mrb[44].mxu0 }
 0x4e6   : > { %v2034_v19 = vsel %vm793_vm1, %v1979_v18, 0.0  ;;  %v4137_v20 = vpop.f32.mrb[45].mxu0 }
 0x4e7   : > { %v2035_v21 = vadd.f32 %v2034_v19, %v2033_v15  ;;  %v1982_v22 = vpop.f32.mrb[46].mxu0 }
 0x4e8   : > { %v4138_v23 = vpop.f32.mrb[47].mxu0 }
 0x4e9   : > { %v2025_v24 = vpop.f32.mrb[44].mxu1 }
 0x4ea   : > { %v2036_v25 = vsel %vm793_vm1, %v2025_v24, 0.0  ;;  %v4143_v28 = vpop.f32.mrb[45].mxu1 }
 0x4eb   : > { %v2037_v29 = vadd.f32 %v2036_v25, %v2035_v21  ;;  %v2028_v33 = vpop.f32.mrb[46].mxu1 }
 0x4ec   : > { %v4144_v35 = vpop.f32.mrb[47].mxu1 }
 0x4ed   : > { %v2038_v36 = vadd.f32 %v2037_v29, %v4810_v6  ;;  %v4433_v6 = vld [vmem:[%s5440_s7 + $0x8] sm:$0xff]   ;;  %s5446_s7 = smov %s5445_s2 }
 0x4ee   : > { %4148 = vmatpush3.bf16.msra.mxu0 %v4433_v6 }
 0x4ef   : > { %v2039_v37 = vsel %vm793_vm1, %v2038_v36, 0.0  ;;  %4161 = vmatprep.subr.bf16.mxu0 %v4595_v1 }
 0x4f0   : > { %2040 = vadd.xlane.f32.xlu0 %v2039_v37 }
 0x57d   : > { %v2041_v38 = vpop.xlane.xlu0 %2040 }
 0x57e   : > { %v2043_v39 = vmul.f32 0.03125, %v2041_v38 }
 0x580   : > { %v2044_v40 = vsub.f32 %v2038_v36, %v2043_v39 }
 0x582   : > { %v2045_v41 = vmul.f32 %v2044_v40, %v2044_v40 }
 0x584   : > { %v2046_v42 = vsel %vm793_vm1, %v2045_v41, 0.0 }
 0x585   : > { %2047 = vadd.xlane.f32.xlu1 %v2046_v42 }
 0x612   : > { %v2048_v32 = vpop.xlane.xlu1 %2047 }
 0x613   : > { %v2049_v44 = vmul.f32 0.03125, %v2048_v32 }
 0x615   : > { %v2050_v45 = vadd.f32 1e-05, %v2049_v44 }
 0x617   : > { %4477 = vrsqrt.f32 %v2050_v45 }
 0x621   : > { %v4478_v27 = vpop.eup %4477 }
 0x622   : > { %v2052_v34 = vmul.f32 %v4478_v27, %v2044_v40 }
 0x624   : > { %v2059_v47 = vmul.f32 %v3778_v31, %v2052_v34 }
 0x626   : > { %v5055_v48 = vadd.f32 %v3779_v46, %v2059_v47 }
 0x628   : > { %v2119_v51 = vpack.c.bf16 %v5055_v48, %v5055_v48 }
 0x62a   : > { %4150 = vmatmul.mubr.msk.bf16.vlgmr.msra.gmra.mrb[48].mxu0 %vm793_vm1, %v2119_v51  ;;  %4158 = vmatmul.mubr.msk.bf16.vlgmr.msra.gmra.mrb[48].mxu1 %vm793_vm1, %v2119_v51 }
 0x62b   : > { %4162 = vmatpush3.bf16.msra.mxu0 %v4435_v49  ;;  %4170 = vmatpush3.bf16.msra.mxu1 %v4436_v50 }
 0x62c   : > { %4163 = vmatprep.subr.bf16.mxu0 %v4595_v1  ;;  %4171 = vmatprep.subr.bf16.mxu1 %v4595_v1 }
 0x62d   : > { %4165 = vmatprep.mubr.msk.bf16.mxu0 %vm4596_vm0, %v4595_v1  ;;  %4173 = vmatprep.mubr.msk.bf16.mxu1 %vm4596_vm0, %v4595_v1 }
 0x62f   : > { %4164 = vmatpush3.bf16.msra.mxu0 %v4437_v52  ;;  %4172 = vmatpush3.bf16.msra.mxu1 %v4438_v53 }
 0x630   : > { %4177 = vmatprep.subr.bf16.mxu0 %v4595_v1  ;;  %4185 = vmatprep.subr.bf16.mxu1 %v4595_v1 }
 0x632   : > { %4166 = vmatmul.mubr.msk.bf16.vlgmr.msra.gmra.mrb[52].mxu0 %vm793_vm1, %v2119_v51  ;;  %4174 = vmatmul.mubr.msk.bf16.vlgmr.msra.gmra.mrb[52].mxu1 %vm793_vm1, %v2119_v51 }
 0x633   : > { %4178 = vmatpush3.bf16.msra.mxu0 %v4439_v54  ;;  %4186 = vmatpush3.bf16.msra.mxu1 %v4440_v55 }
 0x634   : > { %4179 = vmatprep.subr.bf16.mxu0 %v4595_v1  ;;  %4187 = vmatprep.subr.bf16.mxu1 %v4595_v1 }
 0x635   : > { %4181 = vmatprep.mubr.msk.bf16.mxu0 %vm4596_vm0, %v4595_v1  ;;  %4189 = vmatprep.mubr.msk.bf16.mxu1 %vm4596_vm0, %v4595_v1 }
 0x637   : > { %4180 = vmatpush3.bf16.msra.mxu0 %v4441_v57  ;;  %4188 = vmatpush3.bf16.msra.mxu1 %v4442_v58 }
 0x638   : > { %4193 = vmatprep.subr.bf16.mxu0 %v4595_v1  ;;  %4201 = vmatprep.subr.bf16.mxu1 %v4595_v1 }
 0x63a   : > { %4182 = vmatmul.mubr.msk.bf16.vlgmr.msra.gmra.mrb[56].mxu0 %vm793_vm1, %v2120_v59  ;;  %4190 = vmatmul.mubr.msk.bf16.vlgmr.msra.gmra.mrb[56].mxu1 %vm793_vm1, %v2120_v59 }
 0x63b   : > { %4194 = vmatpush3.bf16.msra.mxu0 %v4443_v60  ;;  %4202 = vmatpush3.bf16.msra.mxu1 %v4444_v61 }
 0x63c   : > { %4195 = vmatprep.subr.bf16.mxu0 %v4595_v1  ;;  %4203 = vmatprep.subr.bf16.mxu1 %v4595_v1 }
 0x63d   : > { %4197 = vmatprep.mubr.msk.bf16.mxu0 %vm4596_vm0, %v4595_v1  ;;  %4205 = vmatprep.mubr.msk.bf16.mxu1 %vm4596_vm0, %v4595_v1 }
 0x63f   : > { %4196 = vmatpush3.bf16.msra.mxu0 %v4445_v62  ;;  %4204 = vmatpush3.bf16.msra.mxu1 %v4446_v63 }
 0x640   : > { %4209 = vmatprep.subr.bf16.mxu0 %v4595_v1  ;;  %4217 = vmatprep.subr.bf16.mxu1 %v4595_v1 }
 0x642   : > { %4198 = vmatmul.mubr.msk.bf16.vlgmr.msra.gmra.mrb[60].mxu0 %vm793_vm1, %v2120_v59  ;;  %4206 = vmatmul.mubr.msk.bf16.vlgmr.msra.gmra.mrb[60].mxu1 %vm793_vm1, %v2120_v59 }
 0x643   : > { %4210 = vmatpush3.bf16.msra.mxu0 %v4447_v0  ;;  %4218 = vmatpush3.bf16.msra.mxu1 %v4448_v2 }
 0x644   : > { %4211 = vmatprep.subr.bf16.mxu0 %v4595_v1  ;;  %4219 = vmatprep.subr.bf16.mxu1 %v4595_v1 }
 0x645   : > { %4213 = vmatprep.mubr.msk.bf16.mxu0 %vm4596_vm0, %v4595_v1  ;;  %4221 = vmatprep.mubr.msk.bf16.mxu1 %vm4596_vm0, %v4595_v1 }
 0x647   : > { %4212 = vmatpush3.bf16.msra.mxu0 %v4449_v3  ;;  %4220 = vmatpush3.bf16.msra.mxu1 %v4450_v4 }
 0x648   : > { %4225 = vmatprep.subr.bf16.mxu0 %v4595_v1  ;;  %4233 = vmatprep.subr.bf16.mxu1 %v4595_v1 }
 0x64a   : > { %4214 = vmatmul.mubr.msk.bf16.vlgmr.msra.gmra.mrb[64].mxu0 %vm793_vm1, %v2120_v59  ;;  %4222 = vmatmul.mubr.msk.bf16.vlgmr.msra.gmra.mrb[64].mxu1 %vm793_vm1, %v2120_v59 }
 0x64b   : > { %4226 = vmatpush3.bf16.msra.mxu0 %v4451_v5  ;;  %4229 = vmatprep.mubr.msk.bf16.mxu0 %vm4596_vm0, %v4595_v1 }
 0x64c   : > { %4227 = vmatprep.subr.bf16.mxu0 %v4595_v1  ;;  %4234 = vmatpush3.bf16.msra.mxu1 %v4452_v7 }
 0x64d   : > { %4237 = vmatprep.mubr.msk.bf16.mxu1 %vm4596_vm0, %v4595_v1  ;;  %4235 = vmatprep.subr.bf16.mxu1 %v4595_v1 }
 0x64f   : > { %4228 = vmatpush3.bf16.msra.mxu0 %v4453_v8 }
 0x650   : > { %4236 = vmatpush3.bf16.msra.mxu1 %v4454_v9  ;;  %4241 = vmatprep.subr.bf16.mxu0 %v4595_v1 }
 0x651   : > { %4247 = vmatprep.subr.bf16.mxu1 %v4595_v1 }
 0x652   : > { %4230 = vmatmul.mubr.msk.bf16.vlgmr.msra.gmra.mrb[68].mxu0 %vm793_vm1, %v2120_v59 }
 0x653   : > { %4238 = vmatmul.mubr.msk.bf16.vlgmr.msra.gmra.mrb[68].mxu1 %vm793_vm1, %v2120_v59  ;;  %4243 = vmatprep.mubr.msk.bf16.mxu0 %vm4596_vm0, %v4595_v1 }
 0x654   : > { %4249 = vmatprep.mubr.msk.bf16.mxu1 %vm4596_vm0, %v4595_v1 }
 0x6fd   : > { %v2170_v10 = vpop.f32.mrb[48].mxu0  ;;  %v2222_v11 = vpop.f32.mrb[48].mxu1 }
 0x6fe   : > { %v4151_v12 = vpop.f32.mrb[49].mxu0  ;;  %v4159_v13 = vpop.f32.mrb[49].mxu1  ;;  %v2751_v26 = vmul.f32 0.35355338, %v2170_v10  ;;  %v2752_v6 = vmul.f32 0.35355338, %v2222_v11 }
 0x6ff   : > { %v2173_v14 = vpop.f32.mrb[50].mxu0  ;;  %v2225_v15 = vpop.f32.mrb[50].mxu1 }
 0x700   : > { %v4152_v16 = vpop.f32.mrb[51].mxu0  ;;  %v4160_v17 = vpop.f32.mrb[51].mxu1  ;;  %v2755_v44 = vpack.c.bf16 %v2751_v26, %v2751_v26  ;;  %v2756_v45 = vpack.c.bf16 %v2752_v6, %v2752_v6 }
 0x701   : > { %v3816_v16 = vld [vmem:[%s703_s4] ss:$0 sm:$0xff]  ;;  %s3845_s4 = sshll.u32 %s3603_s30, 7  ;;  %s4503_s30 = sshll.u32 %s4598_s18, 4  ;;  %s4504_s30 = int_to_ptr.vmem [resolvable:$false] %s4503_s30 }
 0x702   : > { %s5327_s24 = scalar_lea.hbm %s5445_s2, %s3845_s4  ;;  %s4505_s20 = scalar_lea.vmem %s4504_s30, 256 }
 0x703   : > { %p4506_p4 = scmp.lt.s32.totalorder %s5329_s23, %s4504_s30  ;;  %p4507_p5 = scmp.lt.s32.totalorder %s4505_s20, %s4499_s19 }
 0x705   : > { %v2274_v18 = vpop.f32.mrb[52].mxu0  ;;  %v2326_v19 = vpop.f32.mrb[52].mxu1  ;;  %p4508_p6 = por %p4507_p5, %p4506_p4 }
 0x706   : > { %v4167_v20 = vpop.f32.mrb[53].mxu0  ;;  %v4175_v21 = vpop.f32.mrb[53].mxu1  ;;  %v2753_v54 = vmul.f32 0.35355338, %v2274_v18  ;;  %v2754_v55 = vmul.f32 0.35355338, %v2326_v19 }
 0x707   : > { %v2277_v22 = vpop.f32.mrb[54].mxu0  ;;  %v2329_v23 = vpop.f32.mrb[54].mxu1  ;;  %p4509_p7 = pnand %p4508_p6, %p4502_p2 }
 0x708   : > { %v4168_v24 = vpop.f32.mrb[55].mxu0  ;;  %v4176_v25 = vpop.f32.mrb[55].mxu1  ;;  %v2757_v56 = vpack.c.bf16 %v2753_v54, %v2753_v54  ;;  %v2758_v57 = vpack.c.bf16 %v2754_v55, %v2754_v55 }
 0x70d   : > { %v2381_v28 = vpop.f32.mrb[56].mxu0  ;;  %v2433_v29 = vpop.f32.mrb[56].mxu1 }
 0x70e   : > { %v2759_v33 = vpack.c.bf16 %v2381_v28, %v2381_v28  ;;  %v2760_v35 = vpack.c.bf16 %v2433_v29, %v2433_v29  ;;  %v4183_v36 = vpop.f32.mrb[57].mxu0  ;;  %v4191_v37 = vpop.f32.mrb[57].mxu1 }
 0x70f   : > { %v2384_v38 = vpop.f32.mrb[58].mxu0  ;;  %v2436_v39 = vpop.f32.mrb[58].mxu1 }
 0x710   : > { %v2773_v40 = vsel %vm1432_vm2, %v2759_v33, 0  ;;  %v2819_v41 = vsel %vm1432_vm2, %v2760_v35, 0  ;;  %v4184_v42 = vpop.f32.mrb[59].mxu0  ;;  %v4192_v43 = vpop.f32.mrb[59].mxu1 }
 0x711   : > { %4242 = vmatpush3.bf16.xpose.msra.mxu0 %v2773_v40  ;;  %4248 = vmatpush3.bf16.xpose.msra.mxu1 %v2819_v41 }
 0x712   : > { %4253 = vmatprep.subr.bf16.mxu0 %v4595_v1  ;;  %4259 = vmatprep.subr.bf16.mxu1 %v4595_v1 }
 0x715   : > { %v2485_v30 = vpop.f32.mrb[60].mxu0  ;;  %v2537_v32 = vpop.f32.mrb[60].mxu1 }
 0x716   : > { %v2761_v27 = vpack.c.bf16 %v2485_v30, %v2485_v30  ;;  %v2762_v31 = vpack.c.bf16 %v2537_v32, %v2537_v32  ;;  %v4199_v34 = vpop.f32.mrb[61].mxu0  ;;  %v4207_v46 = vpop.f32.mrb[61].mxu1 }
 0x717   : > { %v2488_v47 = vpop.f32.mrb[62].mxu0  ;;  %v2540_v49 = vpop.f32.mrb[62].mxu1 }
 0x718   : > { %v2865_v50 = vsel %vm1432_vm2, %v2761_v27, 0  ;;  %v2911_v51 = vsel %vm1432_vm2, %v2762_v31, 0  ;;  %v4200_v52 = vpop.f32.mrb[63].mxu0  ;;  %v4208_v53 = vpop.f32.mrb[63].mxu1  ;;  %4244 = vmatmul.mubr.msk.bf16.vlgmr.msra.gmra.mrb[72].mxu0 %vm1432_vm2, %v2755_v44  ;;  %4250 = vmatmul.mubr.msk.bf16.vlgmr.msra.gmra.mrb[72].mxu1 %vm1432_vm2, %v2756_v45 }
 0x719   : > { %4254 = vmatpush3.bf16.xpose.msra.mxu0 %v2865_v50  ;;  %4260 = vmatpush3.bf16.xpose.msra.mxu1 %v2911_v51 }
 0x71a   : > { %4255 = vmatprep.mubr.msk.bf16.mxu0 %vm4596_vm0, %v4595_v1  ;;  %4261 = vmatprep.mubr.msk.bf16.mxu1 %vm4596_vm0, %v4595_v1 }
 0x71b   : > { %4265 = vmatprep.subr.bf16.mxu0 %v4595_v1  ;;  %4271 = vmatprep.subr.bf16.mxu1 %v4595_v1 }
 0x71d   : > { %v2589_v58 = vpop.f32.mrb[64].mxu0  ;;  %v2641_v62 = vpop.f32.mrb[64].mxu1 }
 0x71e   : > { %v3001_v59 = vpack.c.bf16 %v2589_v58, %v2589_v58  ;;  %v4215_v60 = vpop.f32.mrb[65].mxu0  ;;  %v3002_v0 = vpack.c.bf16 %v2641_v62, %v2641_v62  ;;  %v4223_v3 = vpop.f32.mrb[65].mxu1 }
 0x71f   : > { %v2592_v61 = vpop.f32.mrb[66].mxu0  ;;  %v2644_v4 = vpop.f32.mrb[66].mxu1 }
 0x720   : > { %4256 = vmatmul.mubr.msk.bf16.vlgmr.msra.gmra.mrb[76].mxu0 %vm1432_vm2, %v2757_v56  ;;  %4262 = vmatmul.mubr.msk.bf16.vlgmr.msra.gmra.mrb[76].mxu1 %vm1432_vm2, %v2758_v57  ;;  %v3009_v63 = vsel %vm1849_vm5, %v3001_v59, 0  ;;  %v4216_v2 = vpop.f32.mrb[67].mxu0  ;;  %v3055_v5 = vsel %vm1849_vm5, %v3002_v0, 0  ;;  %v4224_v7 = vpop.f32.mrb[67].mxu1 }
 0x721   : > { %4267 = vmatprep.mubr.msk.bf16.mxu0 %vm4596_vm0, %v4595_v1  ;;  %4273 = vmatprep.mubr.msk.bf16.mxu1 %vm4596_vm0, %v4595_v1 }
 0x722   : > { %4266 = vmatpush3.bf16.msra.mxu0 %v3009_v63  ;;  %4272 = vmatpush3.bf16.msra.mxu1 %v3055_v5 }
 0x723   : > { %4277 = vmatprep.subr.bf16.mxu0 %v4595_v1  ;;  %4283 = vmatprep.subr.bf16.mxu1 %v4595_v1 }
 0x725   : > { %v5203_v8 = vpop.f32.mrb[68].mxu0 }
 0x726   : > { %v5205_v9 = vpop.f32.mrb[68].mxu1  ;;  %v4231_v10 = vpop.f32.mrb[69].mxu0  ;;  %v3003_v7 = vpack.c.bf16 %v5203_v8, %v5203_v8  ;;  %v2116_v8 = vld [vmem:[%s5390_s9 + $0x4] sm:$0xf] }
 0x727   : > { %v4239_v11 = vpop.f32.mrb[69].mxu1  ;;  %v2696_v12 = vpop.f32.mrb[70].mxu0  ;;  %v3004_v4 = vpack.c.bf16 %v5205_v9, %v5205_v9 }
 0x728   : > { %v2748_v13 = vpop.f32.mrb[70].mxu1  ;;  %v4232_v14 = vpop.f32.mrb[71].mxu0 }
 0x729   : > { %v4240_v15 = vpop.f32.mrb[71].mxu1  ;;  %v3147_v13 = vsel %vm1849_vm5, %v3004_v4, 0  ;;  %v3101_v14 = vsel %vm1849_vm5, %v3003_v7, 0 }
 0x7eb   : > { %v2809_v17 = vpop.f32.mrb[72].mxu0  ;;  %v2855_v18 = vpop.f32.mrb[72].mxu1 }
 0x7ec   : > { %v2810_v19 = vadd.f32 %v3816_v16, %v2809_v17  ;;  %v2856_v20 = vadd.f32 %v3816_v16, %v2855_v18  ;;  %v4245_v21 = vpop.f32.mrb[73].mxu0  ;;  %v4251_v22 = vpop.f32.mrb[73].mxu1  ;;  %v2115_v17 = vld [vmem:[%s5390_s9] sm:$0xf] }
 0x7ed   : > { %v2812_v23 = vpop.f32.mrb[74].mxu0  ;;  %v2858_v24 = vpop.f32.mrb[74].mxu1  ;;  %v3197_v22 = vsel %vm1849_vm5, %v2115_v17, 0  ;;  %v4458_v17 = vld [vmem:[%s5393_s12 + $0x8] sm:$0xff]  }
 0x7ee   : > { %v4246_v25 = vpop.f32.mrb[75].mxu0  ;;  %v4252_v28 = vpop.f32.mrb[75].mxu1  ;;  %v2956_v29 = vsel %vm1432_vm2, %v2856_v20, -inf  ;;  %v2953_v33 = vsel %vm1432_vm2, %v2810_v19, -inf  ;;  %v2118_v23 = vld [vmem:[%s5390_s9 + $0xc] sm:$0xf] }
 0x7ef   : > { %2957 = vmax.xlane.f32.xlu1 %v2956_v29  ;;  %2954 = vmax.xlane.f32.xlu0 %v2953_v33  ;;  %v2117_v24 = vld [vmem:[%s5390_s9 + $0x8] sm:$0xf] }
 0x7f3   : > { %v2901_v35 = vpop.f32.mrb[76].mxu0  ;;  %v2947_v36 = vpop.f32.mrb[76].mxu1 }
 0x7f4   : > { %v2902_v37 = vadd.f32 %v3816_v16, %v2901_v35  ;;  %v2948_v38 = vadd.f32 %v3816_v16, %v2947_v36  ;;  %v4257_v39 = vpop.f32.mrb[77].mxu0  ;;  %v4263_v40 = vpop.f32.mrb[77].mxu1  ;;  %v3335_v35 = vsel %vm1849_vm5, %v2118_v23, 0 }
 0x7f5   : > { %v2904_v41 = vpop.f32.mrb[78].mxu0  ;;  %v2950_v42 = vpop.f32.mrb[78].mxu1  ;;  %v3289_v39 = vsel %vm1849_vm5, %v2117_v24, 0  ;;  %v3830_v24 = vld [vmem:[%s5398_s17] ss:$0 sm:$0xff] }
 0x7f6   : > { %v4258_v43 = vpop.f32.mrb[79].mxu0  ;;  %v4264_v26 = vpop.f32.mrb[79].mxu1  ;;  %v2962_v6 = vsel %vm1432_vm2, %v2948_v38, -inf  ;;  %v2959_v30 = vsel %vm1432_vm2, %v2902_v37, -inf }
 0x7f7   : > { %2963 = vmax.xlane.f32.xlu1 %v2962_v6  ;;  %2960 = vmax.xlane.f32.xlu0 %v2959_v30 }
 0x87c   : > { %v2958_v32 = vpop.xlane.xlu1 %2957  ;;  %v2955_v44 = vpop.xlane.xlu0 %2954 }
 0x87d   : > { %v2966_v45 = vsub.f32 %v2856_v20, %v2958_v32  ;;  %v2965_v27 = vsub.f32 %v2810_v19, %v2955_v44  ;;  %v3243_v20 = vsel %vm1849_vm5, %v2116_v8, 0 }
 0x87f   : > { %v2971_v31 = vmul.f32 1.442695, %v2966_v45  ;;  %v2969_v34 = vmul.f32 1.442695, %v2965_v27 }
 0x881   : > { %4479 = vpow2.f32 %v2971_v31 }
 0x882   : > { %4481 = vpow2.f32 %v2969_v34 }
 0x884   : > { %v2964_v46 = vpop.xlane.xlu1 %2963  ;;  %v2961_v47 = vpop.xlane.xlu0 %2960 }
 0x885   : > { %v2968_v49 = vsub.f32 %v2948_v38, %v2964_v46  ;;  %v2967_v50 = vsub.f32 %v2902_v37, %v2961_v47 }
 0x887   : > { %v2975_v51 = vmul.f32 1.442695, %v2968_v49  ;;  %v2973_v52 = vmul.f32 1.442695, %v2967_v50 }
 0x889   : > { %4483 = vpow2.f32 %v2975_v51 }
 0x88a   : > { %4485 = vpow2.f32 %v2973_v52 }
 0x88b   : > { %v4480_v53 = vpop.eup %4479 }
 0x88c   : > { %v4482_v54 = vpop.eup %4481  ;;  %v2980_v55 = vsel %vm1432_vm2, %v4480_v53, 0.0 }
 0x88d   : > { %2981 = vadd.xlane.f32.xlu1 %v2980_v55  ;;  %v2977_v56 = vsel %vm1432_vm2, %v4482_v54, 0.0 }
 0x88e   : > { %2978 = vadd.xlane.f32.xlu0 %v2977_v56 }
 0x893   : > { %v4484_v57 = vpop.eup %4483 }
 0x894   : > { %v4486_v58 = vpop.eup %4485  ;;  %v2986_v59 = vsel %vm1432_vm2, %v4484_v57, 0.0 }
 0x895   : > { %2987 = vadd.xlane.f32.xlu1 %v2986_v59  ;;  %v2983_v60 = vsel %vm1432_vm2, %v4486_v58, 0.0 }
 0x896   : > { %2984 = vadd.xlane.f32.xlu0 %v2983_v60 }
 0x91a   : > { %v2982_v61 = vpop.xlane.xlu1 %2981 }
 0x91b   : > { %4487 = vrcp.f32 %v2982_v61  ;;  %v2979_v62 = vpop.xlane.xlu0 %2978 }
 0x91c   : > { %4489 = vrcp.f32 %v2979_v62 }
 0x922   : > { %v2988_v63 = vpop.xlane.xlu1 %2987 }
 0x923   : > { %4491 = vrcp.f32 %v2988_v63  ;;  %v2985_v0 = vpop.xlane.xlu0 %2984 }
 0x924   : > { %4493 = vrcp.f32 %v2985_v0 }
 0x925   : > { %v4488_v2 = vpop.eup %4487 }
 0x926   : > { %v4490_v3 = vpop.eup %4489  ;;  %v2994_v5 = vmul.f32 %v4488_v2, %v4480_v53 }
 0x927   : > { %v2993_v10 = vmul.f32 %v4490_v3, %v4482_v54 }
 0x928   : > { %v2998_v11 = vpack.c.bf16 %v2994_v5, %v2994_v5 }
 0x929   : > { %v2997_v12 = vpack.c.bf16 %v2993_v10, %v2993_v10 }
 0x92a   : > { %4274 = vmatmul.mubr.msk.bf16.vlgmr.msra.gmra.mrb[80].mxu1 %vm1432_vm2, %v2998_v11 }
 0x92b   : > { %4268 = vmatmul.mubr.msk.bf16.vlgmr.msra.gmra.mrb[80].mxu0 %vm1432_vm2, %v2997_v12  ;;  %4284 = vmatpush3.bf16.msra.mxu1 %v3147_v13 }
 0x92c   : > { %4278 = vmatpush3.bf16.msra.mxu0 %v3101_v14  ;;  %4279 = vmatprep.mubr.msk.bf16.mxu0 %vm4596_vm0, %v4595_v1 }
 0x92d   : > { %v4492_v9 = vpop.eup %4491  ;;  %4285 = vmatprep.mubr.msk.bf16.mxu1 %vm4596_vm0, %v4595_v1  ;;  %4289 = vmatprep.subr.bf16.mxu0 %v4595_v1 }
 0x92e   : > { %v4494_v15 = vpop.eup %4493  ;;  %v2996_v16 = vmul.f32 %v4492_v9, %v4484_v57  ;;  %4295 = vmatprep.subr.bf16.mxu1 %v4595_v1 }
 0x92f   : > { %v2995_v18 = vmul.f32 %v4494_v15, %v4486_v58  ;;  %v4455_v15 = vld [vmem:[%s5391_s10] sm:$0xff]  }
 0x930   : > { %v3000_v19 = vpack.c.bf16 %v2996_v16, %v2996_v16  ;;  %v4456_v16 = vld [vmem:[%s5391_s10 + $0x8] sm:$0xff]  }
 0x931   : > { %v2999_v21 = vpack.c.bf16 %v2995_v18, %v2995_v18 }
 0x932   : > { %4286 = vmatmul.mubr.msk.bf16.vlgmr.msra.gmra.mrb[84].mxu1 %vm1432_vm2, %v3000_v19 }
 0x933   : > { %4280 = vmatmul.mubr.msk.bf16.vlgmr.msra.gmra.mrb[84].mxu0 %vm1432_vm2, %v2999_v21  ;;  %4296 = vmatpush3.bf16.msra.mxu1 %v3243_v20 }
 0x934   : > { %4290 = vmatpush3.bf16.msra.mxu0 %v3197_v22  ;;  %4291 = vmatprep.mubr.msk.bf16.mxu0 %vm4596_vm0, %v4595_v1  ;;  %v3829_v22 = vld [vmem:[%s5397_s16] ss:$0 sm:$0xff] }
 0x935   : > { %4297 = vmatprep.mubr.msk.bf16.mxu1 %vm4596_vm0, %v4595_v1  ;;  %4301 = vmatprep.subr.bf16.mxu0 %v4595_v1 }
 0x936   : > { %4307 = vmatprep.subr.bf16.mxu1 %v4595_v1 }
 0x9fd   : > { %v3091_v25 = vpop.f32.mrb[80].mxu1 }
 0x9fe   : > { %v3045_v28 = vpop.f32.mrb[80].mxu0  ;;  %v3190_v29 = vpack.c.bf16 %v3091_v25, %v3091_v25  ;;  %v4275_v33 = vpop.f32.mrb[81].mxu1 }
 0x9ff   : > { %v3189_v36 = vpack.c.bf16 %v3045_v28, %v3045_v28  ;;  %v4269_v37 = vpop.f32.mrb[81].mxu0  ;;  %v3094_v38 = vpop.f32.mrb[82].mxu1  ;;  %v4459_v33 = vld [vmem:[%s5393_s12 + $0x10] sm:$0xff]  }
 0xa00   : > { %v3048_v40 = vpop.f32.mrb[82].mxu0  ;;  %v4276_v41 = vpop.f32.mrb[83].mxu1  ;;  %4298 = vmatmul.mubr.msk.bf16.vlgmr.msra.gmra.mrb[88].mxu1 %vm1432_vm2, %v3190_v29 }
 0xa01   : > { %v4270_v42 = vpop.f32.mrb[83].mxu0  ;;  %4292 = vmatmul.mubr.msk.bf16.vlgmr.msra.gmra.mrb[88].mxu0 %vm1432_vm2, %v3189_v36  ;;  %4308 = vmatpush3.bf16.msra.mxu1 %v3335_v35  ;;  %v4460_v35 = vld [vmem:[%s5393_s12 + $0x18] sm:$0xff]   ;;  %v3831_v36 = vld [vmem:[%s5392_s11] ss:$0 sm:$0xff] }
 0xa02   : > { %4302 = vmatpush3.bf16.msra.mxu0 %v3289_v39  ;;  %4303 = vmatprep.mubr.msk.bf16.mxu0 %vm4596_vm0, %v4595_v1 }
 0xa03   : > { %4309 = vmatprep.mubr.msk.bf16.mxu1 %vm4596_vm0, %v4595_v1  ;;  %4313 = vmatprep.subr.bf16.mxu0 %v4595_v1 }
 0xa04   : > { %4321 = vmatprep.subr.bf16.mxu1 %v4595_v1 }
 0xa05   : > { %v3183_v43 = vpop.f32.mrb[84].mxu1 }
 0xa06   : > { %v3137_v26 = vpop.f32.mrb[84].mxu0  ;;  %v3192_v6 = vpack.c.bf16 %v3183_v43, %v3183_v43  ;;  %v4287_v30 = vpop.f32.mrb[85].mxu1 }
 0xa07   : > { %v3191_v32 = vpack.c.bf16 %v3137_v26, %v3137_v26  ;;  %v4281_v44 = vpop.f32.mrb[85].mxu0  ;;  %v3186_v45 = vpop.f32.mrb[86].mxu1 }
 0xa08   : > { %v3140_v27 = vpop.f32.mrb[86].mxu0  ;;  %v4288_v31 = vpop.f32.mrb[87].mxu1  ;;  %4310 = vmatmul.mubr.msk.bf16.vlgmr.msra.gmra.mrb[92].mxu1 %vm1432_vm2, %v3192_v6 }
 0xa09   : > { %v4282_v34 = vpop.f32.mrb[87].mxu0  ;;  %4304 = vmatmul.mubr.msk.bf16.vlgmr.msra.gmra.mrb[92].mxu0 %vm1432_vm2, %v3191_v32  ;;  %4329 = vmatprep.mubr.msk.bf16.mxu1 %vm4596_vm0, %v4595_v1 }
 0xa0a   : > { %4317 = vmatprep.mubr.msk.bf16.mxu0 %vm4596_vm0, %v4595_v1  ;;  %4314 = vmatpush3.bf16.msra.mxu0 %v4455_v15 }
 0xa0b   : > { %4315 = vmatprep.subr.bf16.mxu0 %v4595_v1 }
 0xa0e   : > { %4316 = vmatpush3.bf16.msra.mxu0 %v4456_v16 }
 0xad3   : > { %v3279_v46 = vpop.f32.mrb[88].mxu1 }
 0xad4   : > { %v3233_v47 = vpop.f32.mrb[88].mxu0  ;;  %v3378_v49 = vsel %vm793_vm1, %v3279_v46, 0.0  ;;  %v4299_v50 = vpop.f32.mrb[89].mxu1 }
 0xad5   : > { %v3377_v51 = vsel %vm793_vm1, %v3233_v47, 0.0  ;;  %v4293_v52 = vpop.f32.mrb[89].mxu0  ;;  %v3282_v53 = vpop.f32.mrb[90].mxu1 }
 0xad6   : > { %v3379_v54 = vadd.f32 %v3378_v49, %v3377_v51  ;;  %v3236_v55 = vpop.f32.mrb[90].mxu0  ;;  %v4300_v56 = vpop.f32.mrb[91].mxu1 }
 0xad7   : > { %v4294_v57 = vpop.f32.mrb[91].mxu0  ;;  %v3842_v56 = vld [vmem:[%s5444_s3] ss:$0 sm:$0xff] }
 0xadb   : > { %v3371_v58 = vpop.f32.mrb[92].mxu1 }
 0xadc   : > { %v3325_v59 = vpop.f32.mrb[92].mxu0  ;;  %v4311_v60 = vpop.f32.mrb[93].mxu1  ;;  %v3382_v4 = vsel %vm793_vm1, %v3371_v58, 0.0 }
 0xadd   : > { %v3380_v61 = vsel %vm793_vm1, %v3325_v59, 0.0  ;;  %v4305_v62 = vpop.f32.mrb[93].mxu0  ;;  %v3374_v63 = vpop.f32.mrb[94].mxu1 }
 0xade   : > { %v3381_v0 = vadd.f32 %v3380_v61, %v3379_v54  ;;  %v3328_v2 = vpop.f32.mrb[94].mxu0  ;;  %v4312_v3 = vpop.f32.mrb[95].mxu1  ;;  %v3841_v54 = vld [vmem:[%s5443_s25] ss:$0 sm:$0xff] }
 0xadf   : > { %v4306_v5 = vpop.f32.mrb[95].mxu0 }
 0xae0   : > { %v3383_v7 = vadd.f32 %v3382_v4, %v3381_v0 }
 0xae2   : > { %v3384_v10 = vadd.f32 %v3383_v7, %v5055_v48  ;;  %v4457_v48 = vld [vmem:[%s5393_s12] sm:$0xff]  }
 0xae3   : > { %4322 = vmatpush3.bf16.msra.mxu1 %v4457_v48 }
 0xae4   : > { %v3385_v11 = vsel %vm793_vm1, %v3384_v10, 0.0  ;;  %4323 = vmatprep.subr.bf16.mxu1 %v4595_v1 }
 0xae5   : > { %3386 = vadd.xlane.f32.xlu0 %v3385_v11 }
 0xae7   : > { %4324 = vmatpush3.bf16.msra.mxu1 %v4458_v17 }
 0xae8   : > { %4325 = vmatprep.subr.bf16.mxu1 %v4595_v1 }
 0xaeb   : > { %4326 = vmatpush3.bf16.msra.mxu1 %v4459_v33 }
 0xaec   : > { %4327 = vmatprep.subr.bf16.mxu1 %v4595_v1  ;;  %v3835_v1 = vld [vmem:[%s5394_s13] ss:$0 sm:$0xff] }
 0xaef   : > { %4328 = vmatpush3.bf16.msra.mxu1 %v4460_v35 }
 0xb72   : > { %v3387_v12 = vpop.xlane.xlu0 %3386 }
 0xb73   : > { %v3388_v13 = vmul.f32 0.03125, %v3387_v12 }
 0xb75   : > { %v3389_v14 = vsub.f32 %v3384_v10, %v3388_v13 }
 0xb77   : > { %v3390_v9 = vmul.f32 %v3389_v14, %v3389_v14 }
 0xb79   : > { %v3391_v8 = vsel %vm793_vm1, %v3390_v9, 0.0 }
 0xb7a   : > { %3392 = vadd.xlane.f32.xlu1 %v3391_v8 }
 0xc07   : > { %v3393_v18 = vpop.xlane.xlu1 %3392 }
 0xc08   : > { %v3394_v19 = vmul.f32 0.03125, %v3393_v18 }
 0xc0a   : > { %v3395_v20 = vadd.f32 1e-05, %v3394_v19 }
 0xc0c   : > { %4495 = vrsqrt.f32 %v3395_v20 }
 0xc16   : > { %v4496_v21 = vpop.eup %4495 }
 0xc17   : > { %v3397_v23 = vmul.f32 %v4496_v21, %v3389_v14 }
 0xc19   : > { %v3404_v25 = vmul.f32 %v3829_v22, %v3397_v23 }
 0xc1b   : > { %v3411_v28 = vadd.f32 %v3830_v24, %v3404_v25 }
 0xc1d   : > { %v3412_v29 = vpack.c.bf16 %v3411_v28, %v3411_v28 }
 0xc1f   : > { %4318 = vmatmul.mubr.msk.bf16.vlgmr.msra.gmra.mrb[96].mxu0 %vm793_vm1, %v3412_v29 }
 0xcf2   : > { %v3472_v37 = vpop.f32.mrb[96].mxu0 }
 0xcf3   : > { %v3473_v38 = vadd.f32 %v3831_v36, %v3472_v37  ;;  %v4319_v39 = vpop.f32.mrb[97].mxu0 }
 0xcf4   : > { %v3475_v40 = vpop.f32.mrb[98].mxu0 }
 0xcf5   : > { %v3478_v41 = vmax.f32 %v3473_v38, 0.0  ;;  %v4320_v42 = vpop.f32.mrb[99].mxu0 }
 0xcf7   : > { %v3479_v43 = vpack.c.bf16 %v3478_v41, %v3478_v41 }
 0xcf9   : > { %4330 = vmatmul.mubr.msk.bf16.vlgmr.msra.gmra.mrb[96].mxu1 %vm3518_vm6, %v3479_v43 }
 0xdcc   : > { %v3556_v26 = vpop.f32.mrb[96].mxu1 }
 0xdcd   : > { %v3557_v6 = vadd.f32 %v3835_v1, %v3556_v26  ;;  %v4331_v30 = vpop.f32.mrb[97].mxu1 }
 0xdce   : > { %v3559_v32 = vpop.f32.mrb[98].mxu1 }
 0xdcf   : > { %v4332_v44 = vpop.f32.mrb[99].mxu1  ;;  %v3562_v45 = vadd.f32 %v3557_v6, %v3411_v28 }
 0xdd1   : > { %v3563_v27 = vsel %vm793_vm1, %v3562_v45, 0.0 }
 0xdd2   : > { %3564 = vadd.xlane.f32.xlu0 %v3563_v27 }
 0xe5f   : > { %v3565_v31 = vpop.xlane.xlu0 %3564 }
 0xe60   : > { %v3566_v34 = vmul.f32 0.03125, %v3565_v31 }
 0xe62   : > { %v3567_v46 = vsub.f32 %v3562_v45, %v3566_v34 }
 0xe64   : > { %v3568_v47 = vmul.f32 %v3567_v46, %v3567_v46 }
 0xe66   : > { %v3569_v49 = vsel %vm793_vm1, %v3568_v47, 0.0 }
 0xe67   : > { %3570 = vadd.xlane.f32.xlu1 %v3569_v49 }
 0xef4   : > { %v3571_v50 = vpop.xlane.xlu1 %3570 }
 0xef5   : > { %v3572_v51 = vmul.f32 0.03125, %v3571_v50 }
 0xef7   : > { %v3573_v52 = vadd.f32 1e-05, %v3572_v51 }
 0xef9   : > { %4497 = vrsqrt.f32 %v3573_v52 }
 0xf03   : > { %v4498_v53 = vpop.eup %4497 }
 0xf04   : > { %v3575_v55 = vmul.f32 %v4498_v53, %v3567_v46 }
 0xf06   : > { %v3582_v57 = vmul.f32 %v3841_v54, %v3575_v55 }
 0xf08   : > { %v3589_v58 = vadd.f32 %v3842_v56, %v3582_v57 }
 0xf0a   : > { %3590 = vst.msk [vmem:[%s683_s29] sm:$0xff] %vm793_vm1, %v3589_v58 }
 0xf0b   : > { %4512 = shalt.err (!%p4509_p7)
}
 0xf0c   : > { %s4513_s5 = scalar_lea.hbm %s5327_s24, 128  ;;  %s4517_s25 = scalar_lea.hbm %s5446_s7, 512 }
 0xf0d   : > { %p4514_p9 = scmp.ne.s32.totalorder %s5327_s24, %s4513_s5  ;;  %p4518_p12 = scmp.lt.u32.totalorder %s5327_s24, %s5446_s7 }
 0xf0e   : > { %p4519_p13 = scmp.lt.u32.totalorder %s4517_s25, %s4513_s5  ;;  %p4521_p1 = scmp.lt.u32.totalorder %s4513_s5, %s5327_s24 }
 0xf0f   : > { %p4515_p10 = pnand %p4514_p9, %p4755_p3 }
 0xf10   : > { %p4520_p0 = por %p4519_p13, %p4518_p12 }
 0xf11   : > { %p4516_p11 = pneg %p4515_p10 }
 0xf12   : > { %p4522_p2 = por %p4521_p1, %p4520_p0 }
 0xf14   : > { %p4523_p4 = pnand %p4522_p2, %p4516_p11 }
 0xf16   : > { %4526 = shalt.err (!%p4523_p4)
}
 0xf17   : > { %4333 = dma.vmem_to_hbm [thread:$0]  (%p4755_p3), %s5329_s23, 128, %s5327_s24, %s3592_s26  }
 0xf18 PF: > { %s5447_s3 = sld [smem:[#allocation9_spill]]  ;;  %s5448_s4 = sld [smem:[#allocation5_spill]] }
 0xf1e   : > { %p4339_p5 = scmp.ge.s32.totalorder %s5447_s3, 2  ;;  %s3619_s2 = sand.u32 1, %s5448_s4  }
 0xf1f   : > { %s3620_s19 = scalar_lea.sflag [#allocation3], %s3619_s2 }
 0xf20   : > { %p4336_p6 = pnand %p4339_p5, %p4764_p8 }
 0xf22   : > { %4560 = dma.done.wait (!%p4336_p6), %s3620_s19, 128  }
 0xf23   : > { %4562 = vsyncadd (!%p4336_p6), %s3620_s19, 4294967168  ;;  %s33_s26 = sadd.s32 1, %s5447_s3   ;;  %s5450_s18 = sld [smem:[#allocation6_spill]] }
 0xf24   : > { %p30_p7 = scmp.ge.s32.totalorder %s33_s26, 6   ;;  %s5451_s23 = sld [smem:[#allocation13_spill]] }
 0xf25   : > { %s5452_s24 = sld [smem:[#allocation7_spill]]  ;;  %s5453_s2 = sld [smem:[#allocation8_spill]] }
 0xf26   : > { %s5454_s25 = sld [smem:[#allocation10_spill]]  ;;  %s5455_s3 = sld [smem:[#allocation11_spill]] }
 0xf27   : > { %s5456_s1 = smov %s4569_s22  ;;  %32 = sbr.rel (!%p30_p7) target bundleno = 17 (0x11), region = 144 }
 0xf29   : > { %s5457_s22 = smov %s5450_s18 }
 0xf2e   :  { %3625 = vsyncpa [#allocation3], 1 }
 0xf2f   :  { %3627 = vsyncpa [#allocation3 + $0x1], 1 }

</bundles_post_ra>
